<compile_context>
chip_gen: v7x
topology: tpu7x:2x2x1
jax: 0.10.0
libtpu: 0.0.40
codegen_flags: <defaults>
</compile_context>

<pallas_src>
import functools

import jax
import jax.numpy as jnp
from jax.experimental import pallas as pl
from jax.experimental.pallas import tpu as pltpu


def _conv3x3_stats_kernel(x_ref, w_ref, y_ref, sum_ref, ssq_ref, *, H, W, Cin, Cp):
    # x_ref : (1, H+2, W+2, Cin) bf16  zero-padded image (one batch element)
    # w_ref : (9*Cin, Cp)        bf16  im2col weights, Cout zero-padded to Cp
    # y_ref : (1, H*W, Cp)       f32   conv output, lane-dense
    # sum_ref/ssq_ref: (1, 1, Cp) f32  per-image partial batch statistics
    xp = x_ref[0]                                          # (H+2, W+2, Cin)

    # im2col patch built ONCE; column order (dh, dw, c) matches w_ref's K axis.
    cols = [xp[dh:dh + H, dw:dw + W, :].reshape(H * W, Cin)
            for dh in range(3) for dw in range(3)]
    patch = jnp.concatenate(cols, axis=1)                  # (H*W, 9*Cin) bf16

    # Single MXU dot, K = 9*Cin, N = Cp (bf16 inputs, f32 accumulation).
    acc = jnp.dot(patch, w_ref[...],
                  preferred_element_type=jnp.float32)      # (H*W, Cp) f32

    # Fused per-image batch statistics (reduced over N in the wrapper, so the
    # batch grid axis can stay "parallel").
    sum_ref[0] = jnp.sum(acc, axis=0, keepdims=True)
    ssq_ref[0] = jnp.sum(acc * acc, axis=0, keepdims=True)

    y_ref[0] = acc                                         # dense 128-lane stores


def _bn_relu_kernel(y_ref, scale_ref, shift_ref, o_ref):
    # Fused affine-normalize + ReLU.  scale/shift: (1, Cp), broadcast over rows.
    o_ref[...] = jnp.maximum(y_ref[...] * scale_ref[...] + shift_ref[...], 0.0)


@jax.jit
def conv2d_bn_forward(x_nchw, w_oihw, bias, gamma, beta, *, eps=1e-5):
    N, Cin, H, W = x_nchw.shape
    Cout = w_oihw.shape[0]
    Cp = ((Cout + 127) // 128) * 128          # lane-dense channel dimension
    del bias  # exactly cancelled by the training-mode BN mean subtraction

    # NCHW -> NHWC, bf16 for the MXU, +1 spatial zero pad: one fused XLA pass.
    x = jnp.transpose(x_nchw, (0, 2, 3, 1)).astype(jnp.bfloat16)
    xpad = jnp.pad(x, ((0, 0), (1, 1), (1, 1), (0, 0)))

    # (Cout, Cin, 3, 3) -> (3, 3, Cin, Cout) -> (9*Cin, Cp);  K = (dh*3+dw)*Cin + c.
    w = jnp.transpose(w_oihw, (2, 3, 1, 0)).reshape(9 * Cin, Cout)
    w = jnp.pad(w, ((0, 0), (0, Cp - Cout))).astype(jnp.bfloat16)

    # ---- fused conv(3x3) + per-image batch statistics ----
    # TODO(synk): for large H*W / Cin (v7x 64 MiB VMEM) add a row-tile grid axis
    # over H with a +/-1 halo and set vmem_limit_bytes explicitly; when
    # N*H*W*Cp*4B fits VMEM, a single-call variant that keeps y fully resident
    # in VMEM (never spilled to HBM) is the next step.
    kern = functools.partial(_conv3x3_stats_kernel, H=H, W=W, Cin=Cin, Cp=Cp)
    y, s, ssq = pl.pallas_call(
        kern,
        out_shape=(jax.ShapeDtypeStruct((N, H * W, Cp), jnp.float32),
                   jax.ShapeDtypeStruct((N, 1, Cp), jnp.float32),
                   jax.ShapeDtypeStruct((N, 1, Cp), jnp.float32)),
        grid=(N,),
        in_specs=[pl.BlockSpec((1, H + 2, W + 2, Cin), lambda n: (n, 0, 0, 0)),
                  pl.BlockSpec((9 * Cin, Cp), lambda n: (0, 0))],
        out_specs=(pl.BlockSpec((1, H * W, Cp), lambda n: (n, 0, 0)),
                   pl.BlockSpec((1, 1, Cp), lambda n: (n, 0, 0)),
                   pl.BlockSpec((1, 1, Cp), lambda n: (n, 0, 0))),
        compiler_params=pltpu.CompilerParams(dimension_semantics=("parallel",)),
    )(xpad, w)

    # Training-mode BatchNorm2d statistics over (N, H, W), biased variance.
    cnt = jnp.float32(N * H * W)
    mean = jnp.sum(s, axis=0) / cnt                        # (1, Cp)
    var = jnp.maximum(jnp.sum(ssq, axis=0) / cnt - mean * mean, 0.0)
    gamma_p = jnp.pad(gamma.astype(jnp.float32), (0, Cp - Cout)).reshape(1, Cp)
    beta_p = jnp.pad(beta.astype(jnp.float32), (0, Cp - Cout)).reshape(1, Cp)
    scale = gamma_p * jax.lax.rsqrt(var + eps)
    shift = beta_p - mean * scale

    # ---- fused BN affine + ReLU, written in place over y ----
    out = pl.pallas_call(
        _bn_relu_kernel,
        out_shape=jax.ShapeDtypeStruct((N, H * W, Cp), jnp.float32),
        grid=(N,),
        in_specs=[pl.BlockSpec((1, H * W, Cp), lambda n: (n, 0, 0)),
                  pl.BlockSpec((1, Cp), lambda n: (0, 0)),
                  pl.BlockSpec((1, Cp), lambda n: (0, 0))],
        out_specs=pl.BlockSpec((1, H * W, Cp), lambda n: (n, 0, 0)),
        input_output_aliases={0: 0},                       # reuse y's buffer
        compiler_params=pltpu.CompilerParams(dimension_semantics=("parallel",)),
    )(y, scale, shift)

    out = out.reshape(N, H, W, Cp)[:, :, :, :Cout]         # drop channel padding
    return jnp.transpose(out, (0, 3, 1, 2))                # back to NCHW


if __name__ == "__main__":
    N, Cin, Cout, H, W = 2, 4, 8, 16, 16

    key = jax.random.PRNGKey(0)
    kx, kw, kb = jax.random.split(key, 3)
    x = jax.random.normal(kx, (N, Cin, H, W), jnp.float32)

    # Deterministic parameter init (PyTorch-style uniform bounds, same shapes).
    fan_in = Cin * 3 * 3
    bound = 1.0 / (fan_in ** 0.5)
    w = jax.random.uniform(kw, (Cout, Cin, 3, 3), jnp.float32, -bound, bound)
    b = jax.random.uniform(kb, (Cout,), jnp.float32, -bound, bound)
    gamma = jnp.ones((Cout,), jnp.float32)        # BatchNorm2d default weight
    beta = jnp.zeros((Cout,), jnp.float32)        # BatchNorm2d default bias

    out = jax.block_until_ready(conv2d_bn_forward(x, w, b, gamma, beta))

    # Pure-JAX reference with the same MXU numerics (bf16 inputs, f32 accum).
    y_ref = jax.lax.conv_general_dilated(
        x.astype(jnp.bfloat16), w.astype(jnp.bfloat16),
        window_strides=(1, 1), padding=((1, 1), (1, 1)),
        dimension_numbers=("NCHW", "OIHW", "NCHW"),
        preferred_element_type=jnp.float32)
    y_ref = y_ref + b.reshape(1, Cout, 1, 1)
    mean = y_ref.mean(axis=(0, 2, 3), keepdims=True)
    var = y_ref.var(axis=(0, 2, 3), keepdims=True)
    ref = jnp.maximum(
        (y_ref - mean) * jax.lax.rsqrt(var + 1e-5) * gamma.reshape(1, Cout, 1, 1)
        + beta.reshape(1, Cout, 1, 1), 0.0)

    assert out.shape == (N, Cout, H, W)
    max_err = float(jnp.max(jnp.abs(out - ref)))
    assert jnp.allclose(out, ref, atol=5e-3, rtol=5e-3), max_err
    print("KERNEL_OK")
</pallas_src>

<mosaic_0001>
module attributes {stable_mosaic.version = 11 : i64} {
  func.func @_conv3x3_stats_kernel(%arg0: i32, %arg1: memref<1x18x18x4xbf16, #tpu.memory_space<vmem>>, %arg2: memref<36x128xbf16, #tpu.memory_space<vmem>>, %arg3: memref<1x256x128xf32, #tpu.memory_space<vmem>>, %arg4: memref<1x1x128xf32, #tpu.memory_space<vmem>>, %arg5: memref<1x1x128xf32, #tpu.memory_space<vmem>>) attributes {dimension_semantics = [#tpu.dimension_semantics<parallel>], iteration_bounds = array<i64: 2>, scalar_prefetch = 0 : i64, scratch_operands = 0 : i64, tpu.core_type = #tpu.core_type<tc>, window_params = [{transform_indices = @transform_0, window_bounds = array<i64: 1, 18, 18, 4>}, {pipeline_mode = #tpu.pipeline_mode<synchronous>, transform_indices = @transform_1, window_bounds = array<i64: 36, 128>}, {transform_indices = @transform_2, window_bounds = array<i64: 1, 256, 128>}, {transform_indices = @transform_3, window_bounds = array<i64: 1, 1, 128>}, {transform_indices = @transform_4, window_bounds = array<i64: 1, 1, 128>}]} {
    %c0 = arith.constant 0 : index
    %c0_0 = arith.constant 0 : index
    %c0_1 = arith.constant 0 : index
    %c0_2 = arith.constant 0 : index
    %0 = vector.load %arg1[%c0, %c0_0, %c0_1, %c0_2] : memref<1x18x18x4xbf16, #tpu.memory_space<vmem>>, vector<1x18x18x4xbf16>
    %1 = vector.shape_cast %0 : vector<1x18x18x4xbf16> to vector<18x18x4xbf16>
    %2 = vector.extract_strided_slice %1 {offsets = [0, 0, 0], sizes = [16, 16, 4], strides = [1, 1, 1]} : vector<18x18x4xbf16> to vector<16x16x4xbf16>
    %3 = vector.shape_cast %2 : vector<16x16x4xbf16> to vector<256x4xbf16>
    %4 = vector.extract_strided_slice %1 {offsets = [0, 1, 0], sizes = [16, 16, 4], strides = [1, 1, 1]} : vector<18x18x4xbf16> to vector<16x16x4xbf16>
    %5 = vector.shape_cast %4 : vector<16x16x4xbf16> to vector<256x4xbf16>
    %6 = vector.extract_strided_slice %1 {offsets = [0, 2, 0], sizes = [16, 16, 4], strides = [1, 1, 1]} : vector<18x18x4xbf16> to vector<16x16x4xbf16>
    %7 = vector.shape_cast %6 : vector<16x16x4xbf16> to vector<256x4xbf16>
    %8 = vector.extract_strided_slice %1 {offsets = [1, 0, 0], sizes = [16, 16, 4], strides = [1, 1, 1]} : vector<18x18x4xbf16> to vector<16x16x4xbf16>
    %9 = vector.shape_cast %8 : vector<16x16x4xbf16> to vector<256x4xbf16>
    %10 = vector.extract_strided_slice %1 {offsets = [1, 1, 0], sizes = [16, 16, 4], strides = [1, 1, 1]} : vector<18x18x4xbf16> to vector<16x16x4xbf16>
    %11 = vector.shape_cast %10 : vector<16x16x4xbf16> to vector<256x4xbf16>
    %12 = vector.extract_strided_slice %1 {offsets = [1, 2, 0], sizes = [16, 16, 4], strides = [1, 1, 1]} : vector<18x18x4xbf16> to vector<16x16x4xbf16>
    %13 = vector.shape_cast %12 : vector<16x16x4xbf16> to vector<256x4xbf16>
    %14 = vector.extract_strided_slice %1 {offsets = [2, 0, 0], sizes = [16, 16, 4], strides = [1, 1, 1]} : vector<18x18x4xbf16> to vector<16x16x4xbf16>
    %15 = vector.shape_cast %14 : vector<16x16x4xbf16> to vector<256x4xbf16>
    %16 = vector.extract_strided_slice %1 {offsets = [2, 1, 0], sizes = [16, 16, 4], strides = [1, 1, 1]} : vector<18x18x4xbf16> to vector<16x16x4xbf16>
    %17 = vector.shape_cast %16 : vector<16x16x4xbf16> to vector<256x4xbf16>
    %18 = vector.extract_strided_slice %1 {offsets = [2, 2, 0], sizes = [16, 16, 4], strides = [1, 1, 1]} : vector<18x18x4xbf16> to vector<16x16x4xbf16>
    %19 = vector.shape_cast %18 : vector<16x16x4xbf16> to vector<256x4xbf16>
    %20 = tpu.concatenate %3, %5, %7, %9, %11, %13, %15, %17, %19 in 1 : vector<256x4xbf16>, vector<256x4xbf16>, vector<256x4xbf16>, vector<256x4xbf16>, vector<256x4xbf16>, vector<256x4xbf16>, vector<256x4xbf16>, vector<256x4xbf16>, vector<256x4xbf16> -> vector<256x36xbf16>
    %c0_3 = arith.constant 0 : index
    %c0_4 = arith.constant 0 : index
    %21 = vector.load %arg2[%c0_3, %c0_4] : memref<36x128xbf16, #tpu.memory_space<vmem>>, vector<36x128xbf16>
    %cst = arith.constant dense<0.000000e+00> : vector<256x128xf32>
    %22 = tpu.matmul %20, %21, %cst {dimension_numbers = #tpu.dot_dimension_numbers<[1], [0], [0], [1], [0, 0, 1, 1], [], []>} : vector<256x36xbf16>, vector<36x128xbf16>, vector<256x128xf32> -> vector<256x128xf32>
    %cst_5 = arith.constant dense<0.000000e+00> : vector<128xf32>
    %23 = vector.multi_reduction <add>, %22, %cst_5 [0] : vector<256x128xf32> to vector<128xf32>
    %24 = vector.shape_cast %23 : vector<128xf32> to vector<1x128xf32>
    %c0_6 = arith.constant 0 : index
    %c0_7 = arith.constant 0 : index
    %c0_8 = arith.constant 0 : index
    %25 = vector.load %arg4[%c0_6, %c0_7, %c0_8] : memref<1x1x128xf32, #tpu.memory_space<vmem>>, vector<1x1x128xf32>
    %26 = vector.shape_cast %25 : vector<1x1x128xf32> to vector<1x128xf32>
    %27 = vector.shape_cast %24 : vector<1x128xf32> to vector<1x1x128xf32>
    tpu.vector_store %arg4[%c0_6, %c0_7, %c0_8], %27 {strides = array<i32>} : memref<1x1x128xf32, #tpu.memory_space<vmem>>, vector<1x1x128xf32>,
    %28 = arith.mulf %22, %22 : vector<256x128xf32>
    %cst_9 = arith.constant dense<0.000000e+00> : vector<128xf32>
    %29 = vector.multi_reduction <add>, %28, %cst_9 [0] : vector<256x128xf32> to vector<128xf32>
    %30 = vector.shape_cast %29 : vector<128xf32> to vector<1x128xf32>
    %c0_10 = arith.constant 0 : index
    %c0_11 = arith.constant 0 : index
    %c0_12 = arith.constant 0 : index
    %31 = vector.load %arg5[%c0_10, %c0_11, %c0_12] : memref<1x1x128xf32, #tpu.memory_space<vmem>>, vector<1x1x128xf32>
    %32 = vector.shape_cast %31 : vector<1x1x128xf32> to vector<1x128xf32>
    %33 = vector.shape_cast %30 : vector<1x128xf32> to vector<1x1x128xf32>
    tpu.vector_store %arg5[%c0_10, %c0_11, %c0_12], %33 {strides = array<i32>} : memref<1x1x128xf32, #tpu.memory_space<vmem>>, vector<1x1x128xf32>,
    %c0_13 = arith.constant 0 : index
    %c0_14 = arith.constant 0 : index
    %c0_15 = arith.constant 0 : index
    %34 = vector.load %arg3[%c0_13, %c0_14, %c0_15] : memref<1x256x128xf32, #tpu.memory_space<vmem>>, vector<1x256x128xf32>
    %35 = vector.shape_cast %34 : vector<1x256x128xf32> to vector<256x128xf32>
    %36 = vector.shape_cast %22 : vector<256x128xf32> to vector<1x256x128xf32>
    tpu.vector_store %arg3[%c0_13, %c0_14, %c0_15], %36 {strides = array<i32>} : memref<1x256x128xf32, #tpu.memory_space<vmem>>, vector<1x256x128xf32>,
    return
  }
  func.func @transform_0(%arg0: i32) -> (i32, i32, i32, i32) {
    %c0_i32 = arith.constant 0 : i32
    %c0_i32_0 = arith.constant 0 : i32
    %c0_i32_1 = arith.constant 0 : i32
    %c0_i32_2 = arith.constant 0 : i32
    return %arg0, %c0_i32, %c0_i32_0, %c0_i32_1 : i32, i32, i32, i32
  }
  func.func @transform_1(%arg0: i32) -> (i32, i32) {
    %c0_i32 = arith.constant 0 : i32
    %c0_i32_0 = arith.constant 0 : i32
    %c0_i32_1 = arith.constant 0 : i32
    return %c0_i32, %c0_i32_0 : i32, i32
  }
  func.func @transform_2(%arg0: i32) -> (i32, i32, i32) {
    %c0_i32 = arith.constant 0 : i32
    %c0_i32_0 = arith.constant 0 : i32
    %c0_i32_1 = arith.constant 0 : i32
    return %arg0, %c0_i32, %c0_i32_0 : i32, i32, i32
  }
  func.func @transform_3(%arg0: i32) -> (i32, i32, i32) {
    %c0_i32 = arith.constant 0 : i32
    %c0_i32_0 = arith.constant 0 : i32
    %c0_i32_1 = arith.constant 0 : i32
    return %arg0, %c0_i32, %c0_i32_0 : i32, i32, i32
  }
  func.func @transform_4(%arg0: i32) -> (i32, i32, i32) {
    %c0_i32 = arith.constant 0 : i32
    %c0_i32_0 = arith.constant 0 : i32
    %c0_i32_1 = arith.constant 0 : i32
    return %arg0, %c0_i32, %c0_i32_0 : i32, i32, i32
  }
}

module attributes {stable_mosaic.version = 11 : i64} {
  func.func @_bn_relu_kernel(%arg0: i32, %arg1: memref<1x256x128xf32, #tpu.memory_space<vmem>>, %arg2: memref<1x128xf32, #tpu.memory_space<vmem>>, %arg3: memref<1x128xf32, #tpu.memory_space<vmem>>, %arg4: memref<1x256x128xf32, #tpu.memory_space<vmem>>) attributes {dimension_semantics = [#tpu.dimension_semantics<parallel>], iteration_bounds = array<i64: 2>, scalar_prefetch = 0 : i64, scratch_operands = 0 : i64, tpu.core_type = #tpu.core_type<tc>, window_params = [{transform_indices = @transform_0, window_bounds = array<i64: 1, 256, 128>}, {pipeline_mode = #tpu.pipeline_mode<synchronous>, transform_indices = @transform_1, window_bounds = array<i64: 1, 128>}, {pipeline_mode = #tpu.pipeline_mode<synchronous>, transform_indices = @transform_2, window_bounds = array<i64: 1, 128>}, {transform_indices = @transform_3, window_bounds = array<i64: 1, 256, 128>}]} {
    %c0 = arith.constant 0 : index
    %c0_0 = arith.constant 0 : index
    %c0_1 = arith.constant 0 : index
    %0 = vector.load %arg1[%c0, %c0_0, %c0_1] : memref<1x256x128xf32, #tpu.memory_space<vmem>>, vector<1x256x128xf32>
    %c0_2 = arith.constant 0 : index
    %c0_3 = arith.constant 0 : index
    %1 = vector.load %arg2[%c0_2, %c0_3] : memref<1x128xf32, #tpu.memory_space<vmem>>, vector<1x128xf32>
    %2 = vector.shape_cast %1 : vector<1x128xf32> to vector<1x1x128xf32>
    %3 = vector.broadcast %2 : vector<1x1x128xf32> to vector<1x256x128xf32>
    %4 = arith.mulf %0, %3 : vector<1x256x128xf32>
    %c0_4 = arith.constant 0 : index
    %c0_5 = arith.constant 0 : index
    %5 = vector.load %arg3[%c0_4, %c0_5] : memref<1x128xf32, #tpu.memory_space<vmem>>, vector<1x128xf32>
    %6 = vector.shape_cast %5 : vector<1x128xf32> to vector<1x1x128xf32>
    %7 = vector.broadcast %6 : vector<1x1x128xf32> to vector<1x256x128xf32>
    %8 = arith.addf %4, %7 : vector<1x256x128xf32>
    %cst = arith.constant 0.000000e+00 : f32
    %9 = vector.broadcast %cst : f32 to vector<1x256x128xf32>
    %10 = arith.maximumf %8, %9 : vector<1x256x128xf32>
    %c0_6 = arith.constant 0 : index
    %c0_7 = arith.constant 0 : index
    %c0_8 = arith.constant 0 : index
    %11 = vector.load %arg4[%c0_6, %c0_7, %c0_8] : memref<1x256x128xf32, #tpu.memory_space<vmem>>, vector<1x256x128xf32>
    tpu.vector_store %arg4[%c0_6, %c0_7, %c0_8], %10 {strides = array<i32>} : memref<1x256x128xf32, #tpu.memory_space<vmem>>, vector<1x256x128xf32>,
    return
  }
  func.func @transform_0(%arg0: i32) -> (i32, i32, i32) {
    %c0_i32 = arith.constant 0 : i32
    %c0_i32_0 = arith.constant 0 : i32
    %c0_i32_1 = arith.constant 0 : i32
    return %arg0, %c0_i32, %c0_i32_0 : i32, i32, i32
  }
  func.func @transform_1(%arg0: i32) -> (i32, i32) {
    %c0_i32 = arith.constant 0 : i32
    %c0_i32_0 = arith.constant 0 : i32
    %c0_i32_1 = arith.constant 0 : i32
    return %c0_i32, %c0_i32_0 : i32, i32
  }
  func.func @transform_2(%arg0: i32) -> (i32, i32) {
    %c0_i32 = arith.constant 0 : i32
    %c0_i32_0 = arith.constant 0 : i32
    %c0_i32_1 = arith.constant 0 : i32
    return %c0_i32, %c0_i32_0 : i32, i32
  }
  func.func @transform_3(%arg0: i32) -> (i32, i32, i32) {
    %c0_i32 = arith.constant 0 : i32
    %c0_i32_0 = arith.constant 0 : i32
    %c0_i32_1 = arith.constant 0 : i32
    return %arg0, %c0_i32, %c0_i32_0 : i32, i32, i32
  }
}

</mosaic_0001>

<bundles_post_ra>
// kernel: conv2d_bn_forward.3
= control target key start
LH: loop header
LB: loop body
LE: loop exit
PB: predicated region body
PF: predicated region fallthrough
CT: control target
= control target key end

     0   :  { %s451_s12 = smov 0   ;;  %s641_s0 = inlined_call_operand.vmem [shape: f32[2,256,128], index: 0, kind: input, shape index: {}, may-alias: {0,3}]   ;;  %s642_s1 = inlined_call_operand.vmem [shape: f32[1,128], index: 1, kind: input, shape index: {}]   ;;  %s643_s2 = inlined_call_operand.vmem [shape: f32[1,128], index: 2, kind: input, shape index: {}]   ;;  %s644_s3 = inlined_call_operand.vmem [shape: f32[2,256,128], index: 3, kind: output, shape index: {}, may-alias: {0,3}]  }
   0x1 LB: > { %s400_s13 = sadd.s32 4294967295, %s429_s12   ;;  %p404_p0 = scmp.ge.s32.totalorder %s429_s12, 1  ;;  %s429_s12 = sphi %s451_s12, %s13_s12  }
   0x2   : > { %p137_p1 = scmp.lt.s32.totalorder %s429_s12, 3 }
   0x4   : > { %p138_p2 = pnand %p404_p0, %p137_p1 }
   0x5   : > { %p161_p3 = scmp.lt.s32.totalorder (!%p138_p2), %s400_s13, 1  ;;  %v465_v0 = vld [vmem:[%s642_s1] ss:$0 sm:$0xff] (!%p138_p2) }
   0x6   : > { %141 = sbr.rel (%p138_p2) target bundleno = 46 (0x2e), region = 32  ;;  %v477_v1 = vld [vmem:[%s643_s2] ss:$0 sm:$0xff] (!%p138_p2) }
   0xd   : > { %s646_s13 = smov (!%p161_p3, %s400_s13), 1 }
   0xe   : > { %s413_s14 = sshll.u32 %s646_s13, 8 }
   0xf   : > { %s472_s19 = scalar_lea.vmem %s641_s0, %s413_s14  ;;  %s519_s24 = scalar_lea.vmem %s644_s3, %s413_s14 }
  0x10   : > { %v171_v2 = vld [vmem:[%s472_s19] sm:$0xff]  ;;  %v172_v3 = vld [vmem:[%s472_s19 + $0x8] sm:$0xff]  ;;  %v173_v4 = vld [vmem:[%s472_s19 + $0x10] sm:$0xff] }
  0x11   : > { %v174_v5 = vld [vmem:[%s472_s19 + $0x18] sm:$0xff]  ;;  %v175_v6 = vld [vmem:[%s472_s19 + $0x20] sm:$0xff]  ;;  %v176_v7 = vld [vmem:[%s472_s19 + $0x28] sm:$0xff]  ;;  %v210_v8 = vmul.f32 %v465_v0, %v171_v2  ;;  %v211_v9 = vmul.f32 %v465_v0, %v172_v3  ;;  %v212_v10 = vmul.f32 %v465_v0, %v173_v4 }
  0x12   : > { %v177_v11 = vld [vmem:[%s472_s19 + $0x30] sm:$0xff]  ;;  %v178_v12 = vld [vmem:[%s472_s19 + $0x38] sm:$0xff]  ;;  %v213_v13 = vmul.f32 %v465_v0, %v174_v5  ;;  %v214_v14 = vmul.f32 %v465_v0, %v175_v6  ;;  %v215_v15 = vmul.f32 %v465_v0, %v176_v7  ;;  %v179_v20 = vld [vmem:[%s472_s19 + $0x40] sm:$0xff] }
  0x13   : > { %v249_v16 = vadd.f32 %v477_v1, %v210_v8  ;;  %v250_v17 = vadd.f32 %v477_v1, %v211_v9  ;;  %v251_v18 = vadd.f32 %v477_v1, %v212_v10  ;;  %v216_v19 = vmul.f32 %v465_v0, %v177_v11  ;;  %v180_v21 = vld [vmem:[%s472_s19 + $0x48] sm:$0xff]  ;;  %v181_v22 = vld [vmem:[%s472_s19 + $0x50] sm:$0xff]  ;;  %v182_v27 = vld [vmem:[%s472_s19 + $0x58] sm:$0xff] }
  0x14   : > { %v252_v23 = vadd.f32 %v477_v1, %v213_v13  ;;  %v253_v24 = vadd.f32 %v477_v1, %v214_v14  ;;  %v254_v25 = vadd.f32 %v477_v1, %v215_v15  ;;  %v217_v26 = vmul.f32 %v465_v0, %v178_v12  ;;  %v183_v28 = vld [vmem:[%s472_s19 + $0x60] sm:$0xff]  ;;  %v184_v29 = vld [vmem:[%s472_s19 + $0x68] sm:$0xff]  ;;  %v185_v34 = vld [vmem:[%s472_s19 + $0x70] sm:$0xff] }
  0x15   : > { %v281_v30 = vmax.f32 %v249_v16, 0.0  ;;  %v282_v31 = vmax.f32 %v250_v17, 0.0  ;;  %v283_v32 = vmax.f32 %v251_v18, 0.0  ;;  %v255_v33 = vadd.f32 %v477_v1, %v216_v19  ;;  %v186_v39 = vld [vmem:[%s472_s19 + $0x78] sm:$0xff]  ;;  %v187_v44 = vld [vmem:[%s472_s19 + $0x80] sm:$0xff]  ;;  %v188_v45 = vld [vmem:[%s472_s19 + $0x88] sm:$0xff] }
  0x16   : > { %v284_v35 = vmax.f32 %v252_v23, 0.0  ;;  %v285_v36 = vmax.f32 %v253_v24, 0.0  ;;  %v286_v37 = vmax.f32 %v254_v25, 0.0  ;;  %v256_v38 = vadd.f32 %v477_v1, %v217_v26  ;;  %v189_v46 = vld [vmem:[%s472_s19 + $0x90] sm:$0xff]  ;;  %v190_v47 = vld [vmem:[%s472_s19 + $0x98] sm:$0xff]  ;;  %v191_v48 = vld [vmem:[%s472_s19 + $0xa0] sm:$0xff] }
  0x17   : > { %v287_v40 = vmax.f32 %v255_v33, 0.0  ;;  %v218_v41 = vmul.f32 %v465_v0, %v179_v20  ;;  %v219_v42 = vmul.f32 %v465_v0, %v180_v21  ;;  %v220_v43 = vmul.f32 %v465_v0, %v181_v22  ;;  %v192_v49 = vld [vmem:[%s472_s19 + $0xa8] sm:$0xff]  ;;  %v193_v50 = vld [vmem:[%s472_s19 + $0xb0] sm:$0xff]  ;;  %v194_v51 = vld [vmem:[%s472_s19 + $0xb8] sm:$0xff] }
  0x18   : > { %v530_v52 = vld [vmem:[%s472_s19 + $0xc0] sm:$0xff]  ;;  %v533_v53 = vld [vmem:[%s472_s19 + $0xc8] sm:$0xff]  ;;  %v288_v54 = vmax.f32 %v256_v38, 0.0  ;;  %v221_v55 = vmul.f32 %v465_v0, %v182_v27  ;;  %v222_v56 = vmul.f32 %v465_v0, %v183_v28  ;;  %v223_v57 = vmul.f32 %v465_v0, %v184_v29  ;;  %v539_v58 = vld [vmem:[%s472_s19 + $0xd0] sm:$0xff] }
  0x19   : > { %v542_v59 = vld [vmem:[%s472_s19 + $0xd8] sm:$0xff]  ;;  %v545_v60 = vld [vmem:[%s472_s19 + $0xe0] sm:$0xff]  ;;  %v257_v61 = vadd.f32 %v477_v1, %v218_v41  ;;  %v258_v62 = vadd.f32 %v477_v1, %v219_v42  ;;  %v259_v63 = vadd.f32 %v477_v1, %v220_v43  ;;  %v224_v2 = vmul.f32 %v465_v0, %v185_v34  ;;  %v552_v3 = vld [vmem:[%s472_s19 + $0xe8] sm:$0xff] }
  0x1a   : > { %v555_v4 = vld [vmem:[%s472_s19 + $0xf0] sm:$0xff]  ;;  %v558_v5 = vld [vmem:[%s472_s19 + $0xf8] sm:$0xff]  ;;  %v260_v6 = vadd.f32 %v477_v1, %v221_v55  ;;  %v261_v7 = vadd.f32 %v477_v1, %v222_v56  ;;  %v262_v8 = vadd.f32 %v477_v1, %v223_v57  ;;  %v225_v9 = vmul.f32 %v465_v0, %v186_v39 }
  0x1b   : > { %313 = vst [vmem:[%s519_s24] sm:$0xff] %v281_v30  ;;  %314 = vst [vmem:[%s519_s24 + $0x8] sm:$0xff] %v282_v31  ;;  %v289_v10 = vmax.f32 %v257_v61, 0.0  ;;  %v290_v11 = vmax.f32 %v258_v62, 0.0  ;;  %v291_v12 = vmax.f32 %v259_v63, 0.0  ;;  %v263_v13 = vadd.f32 %v477_v1, %v224_v2 }
  0x1c   : > { %315 = vst [vmem:[%s519_s24 + $0x10] sm:$0xff] %v283_v32  ;;  %316 = vst [vmem:[%s519_s24 + $0x18] sm:$0xff] %v284_v35  ;;  %v292_v14 = vmax.f32 %v260_v6, 0.0  ;;  %v293_v15 = vmax.f32 %v261_v7, 0.0  ;;  %v294_v16 = vmax.f32 %v262_v8, 0.0  ;;  %v264_v17 = vadd.f32 %v477_v1, %v225_v9 }
  0x1d   : > { %317 = vst [vmem:[%s519_s24 + $0x20] sm:$0xff] %v285_v36  ;;  %318 = vst [vmem:[%s519_s24 + $0x28] sm:$0xff] %v286_v37  ;;  %v295_v18 = vmax.f32 %v263_v13, 0.0  ;;  %v226_v19 = vmul.f32 %v465_v0, %v187_v44  ;;  %v227_v20 = vmul.f32 %v465_v0, %v188_v45  ;;  %v228_v21 = vmul.f32 %v465_v0, %v189_v46 }
  0x1e   : > { %319 = vst [vmem:[%s519_s24 + $0x30] sm:$0xff] %v287_v40  ;;  %320 = vst [vmem:[%s519_s24 + $0x38] sm:$0xff] %v288_v54  ;;  %v296_v22 = vmax.f32 %v264_v17, 0.0  ;;  %v229_v23 = vmul.f32 %v465_v0, %v190_v47  ;;  %v230_v24 = vmul.f32 %v465_v0, %v191_v48  ;;  %v231_v25 = vmul.f32 %v465_v0, %v192_v49 }
  0x1f   : > { %321 = vst [vmem:[%s519_s24 + $0x40] sm:$0xff] %v289_v10  ;;  %322 = vst [vmem:[%s519_s24 + $0x48] sm:$0xff] %v290_v11  ;;  %v265_v26 = vadd.f32 %v477_v1, %v226_v19  ;;  %v266_v27 = vadd.f32 %v477_v1, %v227_v20  ;;  %v267_v28 = vadd.f32 %v477_v1, %v228_v21 }
  0x20   : > { %323 = vst [vmem:[%s519_s24 + $0x50] sm:$0xff] %v291_v12  ;;  %324 = vst [vmem:[%s519_s24 + $0x58] sm:$0xff] %v292_v14  ;;  %v232_v29 = vmul.f32 %v465_v0, %v193_v50  ;;  %v268_v30 = vadd.f32 %v477_v1, %v229_v23  ;;  %v269_v31 = vadd.f32 %v477_v1, %v230_v24 }
  0x21   : > { %325 = vst [vmem:[%s519_s24 + $0x60] sm:$0xff] %v293_v15  ;;  %326 = vst [vmem:[%s519_s24 + $0x68] sm:$0xff] %v294_v16  ;;  %v270_v32 = vadd.f32 %v477_v1, %v231_v25  ;;  %v233_v33 = vmul.f32 %v465_v0, %v194_v51  ;;  %v297_v34 = vmax.f32 %v265_v26, 0.0  ;;  %v298_v35 = vmax.f32 %v266_v27, 0.0 }
  0x22   : > { %327 = vst [vmem:[%s519_s24 + $0x70] sm:$0xff] %v295_v18  ;;  %328 = vst [vmem:[%s519_s24 + $0x78] sm:$0xff] %v296_v22  ;;  %v299_v36 = vmax.f32 %v267_v28, 0.0  ;;  %v271_v37 = vadd.f32 %v477_v1, %v232_v29  ;;  %v300_v38 = vmax.f32 %v268_v30, 0.0  ;;  %v301_v39 = vmax.f32 %v269_v31, 0.0 }
  0x23   : > { %v302_v40 = vmax.f32 %v270_v32, 0.0  ;;  %v272_v41 = vadd.f32 %v477_v1, %v233_v33  ;;  %329 = vst [vmem:[%s519_s24 + $0x80] sm:$0xff] %v297_v34  ;;  %330 = vst [vmem:[%s519_s24 + $0x88] sm:$0xff] %v298_v35  ;;  %v234_v43 = vmul.f32 %v465_v0, %v530_v52  ;;  %v235_v44 = vmul.f32 %v465_v0, %v533_v53 }
  0x24   : > { %331 = vst [vmem:[%s519_s24 + $0x90] sm:$0xff] %v299_v36  ;;  %v303_v42 = vmax.f32 %v271_v37, 0.0  ;;  %v236_v45 = vmul.f32 %v465_v0, %v539_v58  ;;  %332 = vst [vmem:[%s519_s24 + $0x98] sm:$0xff] %v300_v38  ;;  %v237_v47 = vmul.f32 %v465_v0, %v542_v59  ;;  %v238_v48 = vmul.f32 %v465_v0, %v545_v60 }
  0x25   : > { %333 = vst [vmem:[%s519_s24 + $0xa0] sm:$0xff] %v301_v39  ;;  %334 = vst [vmem:[%s519_s24 + $0xa8] sm:$0xff] %v302_v40  ;;  %v304_v46 = vmax.f32 %v272_v41, 0.0  ;;  %v239_v49 = vmul.f32 %v465_v0, %v552_v3  ;;  %v273_v50 = vadd.f32 %v477_v1, %v234_v43  ;;  %v274_v51 = vadd.f32 %v477_v1, %v235_v44 }
  0x26   : > { %335 = vst [vmem:[%s519_s24 + $0xb0] sm:$0xff] %v303_v42  ;;  %v275_v52 = vadd.f32 %v477_v1, %v236_v45  ;;  %v240_v53 = vmul.f32 %v465_v0, %v555_v4  ;;  %v276_v54 = vadd.f32 %v477_v1, %v237_v47  ;;  %v277_v55 = vadd.f32 %v477_v1, %v238_v48 }
  0x27   : > { %336 = vst [vmem:[%s519_s24 + $0xb8] sm:$0xff] %v304_v46  ;;  %v278_v56 = vadd.f32 %v477_v1, %v239_v49  ;;  %v241_v57 = vmul.f32 %v465_v0, %v558_v5  ;;  %v305_v58 = vmax.f32 %v273_v50, 0.0  ;;  %v306_v59 = vmax.f32 %v274_v51, 0.0 }
  0x28   : > { %v307_v60 = vmax.f32 %v275_v52, 0.0  ;;  %v279_v61 = vadd.f32 %v477_v1, %v240_v53  ;;  %v308_v62 = vmax.f32 %v276_v54, 0.0  ;;  %v309_v63 = vmax.f32 %v277_v55, 0.0 }
  0x29   : > { %v310_v2 = vmax.f32 %v278_v56, 0.0  ;;  %v280_v3 = vadd.f32 %v477_v1, %v241_v57  ;;  %337 = vst [vmem:[%s519_s24 + $0xc0] sm:$0xff] %v305_v58  ;;  %338 = vst [vmem:[%s519_s24 + $0xc8] sm:$0xff] %v306_v59 }
  0x2a   : > { %339 = vst [vmem:[%s519_s24 + $0xd0] sm:$0xff] %v307_v60  ;;  %v311_v4 = vmax.f32 %v279_v61, 0.0  ;;  %340 = vst [vmem:[%s519_s24 + $0xd8] sm:$0xff] %v308_v62 }
  0x2b   : > { %341 = vst [vmem:[%s519_s24 + $0xe0] sm:$0xff] %v309_v63  ;;  %342 = vst [vmem:[%s519_s24 + $0xe8] sm:$0xff] %v310_v2  ;;  %v312_v0 = vmax.f32 %v280_v3, 0.0 }
  0x2c   : > { %343 = vst [vmem:[%s519_s24 + $0xf0] sm:$0xff] %v311_v4 }
  0x2d   : > { %344 = vst [vmem:[%s519_s24 + $0xf8] sm:$0xff] %v312_v0 }
  0x2e PF: > { %s13_s12 = sadd.s32 1, %s429_s12  }
  0x2f   : > { %p10_p4 = scmp.ge.s32.totalorder %s13_s12, 4  }
  0x31   :  { %12 = sbr.rel (!%p10_p4) target bundleno = 1 (0x1), region = 62 }

// kernel: conv2d_bn_forward.2
= control target key start
LH: loop header
LB: loop body
LE: loop exit
PB: predicated region body
PF: predicated region fallthrough
CT: control target
= control target key end

     0   :  { %s2295_s15 = smov 0   ;;  %s3230_s0 = inlined_call_operand.vmem [shape: bf16[2,18,18,4], index: 0, kind: input, shape index: {}]   ;;  %s3231_s1 = inlined_call_operand.vmem [shape: bf16[36,128], index: 1, kind: input, shape index: {}]   ;;  %s3232_s2 = inlined_call_operand.vmem [shape: f32[2,256,128], index: 2, kind: output, shape index: {0}]   ;;  %s3233_s3 = inlined_call_operand.vmem [shape: f32[2,1,128], index: 3, kind: output, shape index: {1}]   ;;  %s3234_s4 = inlined_call_operand.vmem [shape: f32[2,1,128], index: 4, kind: output, shape index: {2}]  }
   0x1 LB: > { %s2049_s16 = sadd.s32 4294967295, %s2260_s15   ;;  %p2053_p0 = scmp.ge.s32.totalorder %s2260_s15, 1  ;;  %s2260_s15 = sphi %s2295_s15, %s15_s15  }
   0x2   : > { %p167_p1 = scmp.lt.s32.totalorder %s2260_s15, 3 }
   0x4   : > { %p168_p2 = pnand %p2053_p0, %p167_p1 }
   0x5   : > { %p199_p3 = scmp.lt.s32.totalorder (!%p168_p2), %s2049_s16, 1  ;;  %vm705_vm0 = vcmask (!%p168_p2), 1042432   ;;  %vm706_vm1 = vcmask (!%p168_p2), 1046532   ;;  %vm270_vm2 = vsmask.f32 (!%p168_p2), 3328  ;;  %s2262_s21 = smov (!%p168_p2), 12  }
   0x6   : > { %171 = sbr.rel (%p168_p2) target bundleno = 632 (0x278), region = 28  ;;  %vm271_vm3 = vsmask.f32 (!%p168_p2), 7440  ;;  %vm2331_vm4 = vmor (!%p168_p2), %vm705_vm0, %vm706_vm1  ;;  %s2263_s22 = smov (!%p168_p2), 20   ;;  %vm1639_vm6 = vcmask (!%p168_p2), 1041408   ;;  %vm1306_vm7 = vcmask (!%p168_p2), 31744  }
   0x7   : > { %vm2366_vm5 = vmor (!%p168_p2), %vm270_vm2, %vm271_vm3  ;;  %s2264_s23 = smov (!%p168_p2), 8   ;;  %s2265_s24 = smov (!%p168_p2), 4   ;;  %vm1355_vm8 = vcmask (!%p168_p2), 64512   ;;  %vm1388_vm9 = vcmask (!%p168_p2), 97280   ;;  %vm1421_vm10 = vcmask (!%p168_p2), 130048   ;;  %vm1454_vm11 = vcmask (!%p168_p2), 162816  }
   0x8   : > { %s2266_s29 = smov (!%p168_p2), 16   ;;  %s2267_s30 = smov (!%p168_p2), 24   ;;  %vm1487_vm12 = vcmask (!%p168_p2), 195584   ;;  %vm1520_vm13 = vcmask (!%p168_p2), 228352   ;;  %vm1553_vm14 = vcmask (!%p168_p2), 261120   ;;  %vm1606_vm15 = vcmask (!%p168_p2), 293888  }
   0x9   : > { %s2268_s5 = smov (!%p168_p2), 28   ;;  %s2269_s6 = smov (!%p168_p2), 32  }
   0xd   : > { %s3240_s16 = smov (!%p199_p3, %s2049_s16), 1 }
   0xe   : > { %s2216_s17 = smul.u32 216, %s3240_s16  ;;  %s2150_s9 = sshll.u32 %s3240_s16, 8 }
   0xf   : > { %s3165_s12 = scalar_lea.vmem %s3232_s2, %s2150_s9 }
  0x10   : > { %s2309_s20 = scalar_lea.vmem %s3230_s0, %s2216_s17  ;;  %s211_s17 = scalar_lea.vmem %s3233_s3, %s3240_s16 }
  0x11   : > { %v2312_v0 = vld [vmem:[%s2309_s20 + $0x18] sm:$0xf]  ;;  %v2315_v1 = vld [vmem:[%s2309_s20 + $0x1c] sm:$0xf]  ;;  %v219_v2 = vld [vmem:[%s2309_s20 + $0xc] sm:$0xf] }
  0x12   : > { %v335_v3 = vshrl.u32 %v2315_v1, 16  ;;  %v2321_v4 = vcombine.low %v2312_v0, %v2315_v1  ;;  %v322_v5 = vshrl.u32 %v2312_v0, 16  ;;  %v325_v6 = vshll.u32 %v2312_v0, 16  ;;  %v220_v7 = vld [vmem:[%s2309_s20 + $0x10] sm:$0xf] }
  0x13   : > { %v307_v8 = vshll.u32 %v220_v7, 16  ;;  %v311_v9 = vshrl.u32 %v220_v7, 16  ;;  %v2326_v10 = vcombine.low %v219_v2, %v220_v7  ;;  %v298_v11 = vshrl.u32 %v219_v2, 16  ;;  %v221_v12 = vld [vmem:[%s2309_s20 + $0x14] sm:$0x1] }
  0x14   : > { %1101 = vrot.lane.b32.xlu1 %v2321_v4, %s2262_s21  ;;  %v301_v14 = vshll.u32 %v219_v2, 16  ;;  %v2058_v15 = vrot.slane %v219_v2, 9  ;;  %v717_v16 = vrot.slane %v220_v7, 5  ;;  %v720_v17 = vrot.slane %v221_v12, 5  ;;  %v2338_v18 = vld [vmem:[%s2309_s20] sm:$0xf] }
  0x15   : > { %v313_v19 = vrot.slane %v311_v9, 4  ;;  %1099 = vrot.lane.b32.xlu0 %v2326_v10, %s2262_s21  ;;  %v300_v20 = vrot.slane %v298_v11, 4  ;;  %v2343_v21 = vld [vmem:[%s2309_s20 + $0x4] sm:$0xf]  ;;  %v218_v22 = vld [vmem:[%s2309_s20 + $0x8] sm:$0x1] }
  0x16   : > { %v303_v23 = vrot.slane %v301_v14, 5  ;;  %v718_v24 = vsel %vm2331_vm4, %v2058_v15, %v717_v16  ;;  %v719_v25 = vrot.slane %v717_v16, 4  ;;  %v2057_v26 = vrot.slane %v2338_v18, 9  ;;  %v224_v35 = vld [vmem:[%s2309_s20 + $0x20] sm:$0x1] }
  0x17   : > { %v710_v27 = vrot.slane %v2343_v21, 5  ;;  %v713_v28 = vrot.slane %v218_v22, 5  ;;  %v274_v29 = vshrl.u32 %v2338_v18, 16  ;;  %v277_v30 = vshll.u32 %v2338_v18, 16  ;;  %v2380_v7 = vld [vmem:[%s2309_s20 + $0x24] sm:$0xf] }
  0x18   : > { %v721_v31 = vsel %vm2331_vm4, %v719_v25, %v720_v17  ;;  %v283_v32 = vshll.u32 %v2343_v21, 16  ;;  %v287_v33 = vshrl.u32 %v2343_v21, 16  ;;  %v293_v34 = vshll.u32 %v218_v22, 16 }
  0x19   : > { %v2108_v36 = vcombine.low %v718_v24, %v721_v31  ;;  %v711_v37 = vsel %vm2331_vm4, %v2057_v26, %v710_v27  ;;  %v712_v38 = vrot.slane %v710_v27, 4  ;;  %v276_v39 = vrot.slane %v274_v29, 4  ;;  %v227_v26 = vld [vmem:[%s2309_s20 + $0x2c] sm:$0x1] }
  0x1a   : > { %v279_v40 = vrot.slane %v277_v30, 5  ;;  %v285_v41 = vrot.slane %v283_v32, 5  ;;  %v289_v42 = vrot.slane %v287_v33, 4  ;;  %v295_v43 = vrot.slane %v293_v34, 5  ;;  %v2245_v34 = vld [vmem:[%s3231_s1 + $0x8] sm:$0xff]  }
  0x1b   : > { %1169 = vrot.lane.b32.xlu0 %v2108_v36, %s2263_s22  ;;  %v714_v44 = vsel %vm2331_vm4, %v712_v38, %v713_v28  ;;  %v2059_v45 = vrot.slane %v2312_v0, 9  ;;  %v724_v46 = vrot.slane %v2315_v1, 5  ;;  %v727_v47 = vrot.slane %v224_v35, 5 }
  0x1c   : > { %v2107_v48 = vcombine.low %v711_v37, %v714_v44  ;;  %v280_v49 = vor.u32 %v279_v40, %v276_v39  ;;  %v290_v50 = vor.u32 %v289_v42, %v285_v41  ;;  %v304_v51 = vor.u32 %v303_v23, %v300_v20 }
  0x1d   : > { %v725_v53 = vsel %vm2331_vm4, %v2059_v45, %v724_v46  ;;  %v726_v54 = vrot.slane %v724_v46, 4  ;;  %v309_v55 = vrot.slane %v307_v8, 5  ;;  %v317_v56 = vshll.u32 %v221_v12, 16  ;;  %v2391_v12 = vld [vmem:[%s2309_s20 + $0x28] sm:$0xf] }
  0x1e   : > { %1064 = vrot.lane.b32.xlu1 %v2107_v48, %s2264_s23  ;;  %v281_v57 = vrot.slane %v280_v49, 4  ;;  %v291_v58 = vrot.slane %v290_v50, 4  ;;  %v305_v59 = vrot.slane %v304_v51, 4  ;;  %v324_v60 = vrot.slane %v322_v5, 4  ;;  %v228_v49 = vld [vmem:[%s2309_s20 + $0x30] sm:$0xf] }
  0x1f   : > { %v728_v61 = vsel %vm2331_vm4, %v726_v54, %v727_v47  ;;  %v314_v62 = vor.u32 %v313_v19, %v309_v55  ;;  %v319_v63 = vrot.slane %v317_v56, 5  ;;  %v327_v2 = vrot.slane %v325_v6, 5  ;;  %v229_v50 = vld [vmem:[%s2309_s20 + $0x34] sm:$0xf] }
  0x20   : > { %v286_v8 = vsel %vm2366_vm5, %v281_v57, %v285_v41  ;;  %v296_v9 = vsel %vm2366_vm5, %v291_v58, %v295_v43  ;;  %v2386_v11 = vcombine.low %v725_v53, %v728_v61  ;;  %v310_v5 = vsel %vm2366_vm5, %v305_v59, %v309_v55 }
  0x21   : > { %v2091_v14 = vcombine.low %v286_v8, %v296_v9  ;;  %v315_v15 = vrot.slane %v314_v62, 4  ;;  %v328_v0 = vor.u32 %v327_v2, %v324_v60  ;;  %v331_v6 = vshll.u32 %v2315_v1, 16  ;;  %v2243_v1 = vld [vmem:[%s3231_s1] sm:$0xff]   ;;  %v230_v62 = vld [vmem:[%s2309_s20 + $0x38] sm:$0x1] }
  0x22   : > { %1066 = vrot.lane.b32.xlu1 %v2108_v36, %s2264_s23  ;;  %v337_v16 = vrot.slane %v335_v3, 4  ;;  %v341_v17 = vshll.u32 %v224_v35, 16  ;;  %v346_v19 = vshrl.u32 %v2380_v7, 16  ;;  %v349_v20 = vshll.u32 %v2380_v7, 16  ;;  %2170 = vmatprep.subr.bf16.mxu0 %v2243_v1 }
  0x23   : > { %984 = vrot.lane.b32.xlu0 %v2091_v14, %s2265_s24  ;;  %v320_v22 = vsel %vm2366_vm5, %v315_v15, %v319_v63  ;;  %v329_v23 = vrot.slane %v328_v0, 4  ;;  %v333_v24 = vrot.slane %v331_v6, 5  ;;  %v359_v25 = vshrl.u32 %v2391_v12, 16  ;;  %2208 = vmatprep.subr.bf16.mxu1 %v2243_v1  ;;  %v2447_v15 = vld [vmem:[%s2309_s20 + $0x3c] sm:$0xf] }
  0x24   : > { %v2092_v3 = vcombine.low %v310_v5, %v320_v22  ;;  %v348_v27 = vrot.slane %v346_v19, 4  ;;  %v343_v29 = vrot.slane %v341_v17, 5  ;;  %v351_v30 = vrot.slane %v349_v20, 5  ;;  %2171 = vmatpush3.bf16.msra.mxu0 %v2243_v1  ;;  %2211 = vmatpush3.bf16.msra.mxu1 %v2243_v1  ;;  %v232_v0 = vld [vmem:[%s2309_s20 + $0x40] sm:$0xf] }
  0x25   : > { %v338_v28 = vor.u32 %v337_v16, %v333_v24  ;;  %v355_v31 = vshll.u32 %v2391_v12, 16  ;;  %v361_v32 = vrot.slane %v359_v25, 4  ;;  %v365_v33 = vshll.u32 %v227_v26, 16  ;;  %2172 = vmatprep.subr.bf16.mxu0 %v2245_v34  ;;  %2209 = vmatprep.subr.bf16.mxu1 %v2245_v34 }
  0x26   : > { %1171 = vrot.lane.b32.xlu1 %v2386_v11, %s2263_s22  ;;  %v334_v35 = vsel %vm2366_vm5, %v329_v23, %v333_v24  ;;  %v352_v37 = vor.u32 %v351_v30, %v348_v27  ;;  %v2422_v45 = vcombine.low %v2380_v7, %v2391_v12  ;;  %v731_v46 = vrot.slane %v2391_v12, 5 }
  0x27   : > { %986 = vrot.lane.b32.xlu0 %v2092_v3, %s2265_s24  ;;  %v339_v36 = vrot.slane %v338_v28, 4  ;;  %v357_v38 = vrot.slane %v355_v31, 5  ;;  %v367_v42 = vrot.slane %v365_v33, 5  ;;  %v2060_v53 = vrot.slane %v2380_v7, 9  ;;  %v233_v33 = vld [vmem:[%s2309_s20 + $0x44] sm:$0x1] }
  0x28   : > { %v353_v40 = vrot.slane %v352_v37, 4  ;;  %2173 = vmatpush3.bf16.msra.mxu0 %v2245_v34  ;;  %2212 = vmatpush3.bf16.msra.mxu1 %v2245_v34  ;;  %v733_v54 = vrot.slane %v731_v46, 4  ;;  %v734_v55 = vrot.slane %v227_v26, 5  ;;  %v370_v56 = vshrl.u32 %v228_v49, 16 }
  0x29   : > { %v344_v39 = vsel %vm2366_vm5, %v339_v36, %v343_v29  ;;  %v362_v41 = vor.u32 %v361_v32, %v357_v38  ;;  %v373_v57 = vshll.u32 %v228_v49, 16  ;;  %v383_v58 = vshrl.u32 %v229_v50, 16 }
  0x2a   : > { %v2093_v43 = vcombine.low %v334_v35, %v344_v39  ;;  %v358_v47 = vsel %vm2366_vm5, %v353_v40, %v357_v38  ;;  %v379_v59 = vshll.u32 %v229_v50, 16  ;;  %v732_v60 = vsel %vm2331_vm4, %v2060_v53, %v731_v46 }
  0x2b   : > { %1134 = vrot.lane.b32.xlu0 %v2092_v3, %s2266_s29  ;;  %v363_v44 = vrot.slane %v362_v41, 4  ;;  %v735_v61 = vsel %vm2331_vm4, %v733_v54, %v734_v55  ;;  %v372_v63 = vrot.slane %v370_v56, 4  ;;  %v375_v2 = vrot.slane %v373_v57, 5 }
  0x2c   : > { %1136 = vrot.lane.b32.xlu1 %v2093_v43, %s2266_s29  ;;  %v381_v7 = vrot.slane %v379_v59, 5  ;;  %v385_v8 = vrot.slane %v383_v58, 4  ;;  %v2110_v9 = vcombine.low %v732_v60, %v735_v61  ;;  %v389_v5 = vshll.u32 %v230_v62, 16  ;;  %v2246_v60 = vld [vmem:[%s3231_s1 + $0x10] ss:$0 sps:$4 sm:$0x33]  }
  0x2d   : > { %v368_v48 = vsel %vm2366_vm5, %v363_v44, %v367_v42  ;;  %v376_v12 = vor.u32 %v375_v2, %v372_v63  ;;  %v738_v16 = vrot.slane %v229_v50, 5  ;;  %v394_v17 = vshrl.u32 %v2447_v15, 16  ;;  %v236_v2 = vld [vmem:[%s2309_s20 + $0x50] sm:$0x1]  ;;  %2214 = vmatprep.subr.msk.bf16.mxu0 %vm1639_vm6, %v2246_v60  ;;  %2215 = vmatprep.subr.msk.bf16.mxu1 %vm1639_vm6, %v2246_v60 }
  0x2e   : > { %v2094_v51 = vcombine.low %v358_v47, %v368_v48  ;;  %v386_v14 = vor.u32 %v385_v8, %v381_v7  ;;  %v391_v6 = vrot.slane %v389_v5, 5  ;;  %v397_v19 = vshll.u32 %v2447_v15, 16 }
  0x2f   : > { %1204 = vrot.lane.b32.xlu0 %v2321_v4, %s2267_s30  ;;  %v377_v20 = vrot.slane %v376_v12, 4  ;;  %v407_v23 = vshrl.u32 %v232_v0, 16  ;;  %v403_v24 = vshll.u32 %v232_v0, 16  ;;  %v2456_v25 = vcombine.low %v228_v49, %v229_v50  ;;  %v2489_v50 = vld [vmem:[%s2309_s20 + $0x4c] sm:$0xf] }
  0x30   : > { %1206 = vrot.lane.b32.xlu1 %v2422_v45, %s2267_s30  ;;  %v387_v22 = vrot.slane %v386_v14, 4  ;;  %v2061_v26 = vrot.slane %v228_v49, 9  ;;  %v740_v1 = vrot.slane %v738_v16, 4  ;;  %v741_v3 = vrot.slane %v230_v62, 5  ;;  %v2486_v49 = vld [vmem:[%s2309_s20 + $0x48] sm:$0xf] }
  0x31   : > { %v396_v27 = vrot.slane %v394_v17, 4  ;;  %v399_v28 = vrot.slane %v397_v19, 5  ;;  %v382_v29 = vsel %vm2366_vm5, %v377_v20, %v381_v7  ;;  %v405_v31 = vrot.slane %v403_v24, 5 }
  0x32   : > { %v392_v30 = vsel %vm2366_vm5, %v387_v22, %v391_v6  ;;  %v409_v32 = vrot.slane %v407_v23, 4  ;;  %v739_v34 = vsel %vm2331_vm4, %v2061_v26, %v738_v16  ;;  %v742_v35 = vsel %vm2331_vm4, %v740_v1, %v741_v3  ;;  %v237_v6 = vld [vmem:[%s2309_s20 + $0x54] sm:$0xf]  ;;  %v238_v16 = vld [vmem:[%s2309_s20 + $0x58] sm:$0xf] }
  0x33   : > { %1239 = vrot.lane.b32.xlu0 %v2093_v43, %s2268_s5  ;;  %v400_v36 = vor.u32 %v399_v28, %v396_v27  ;;  %v413_v38 = vshll.u32 %v233_v33, 16  ;;  %v2111_v39 = vcombine.low %v739_v34, %v742_v35  ;;  %v745_v44 = vrot.slane %v232_v0, 5  ;;  %v239_v35 = vld [vmem:[%s2309_s20 + $0x5c] sm:$0x1] }
  0x34   : > { %1241 = vrot.lane.b32.xlu1 %v2094_v51, %s2268_s5  ;;  %v410_v37 = vor.u32 %v409_v32, %v405_v31  ;;  %v2075_v46 = vcombine.low %v2338_v18, %v2343_v21  ;;  %v748_v55 = vrot.slane %v233_v33, 5  ;;  %v418_v56 = vshrl.u32 %v2486_v49, 16 }
  0x35   : > { %v401_v40 = vrot.slane %v400_v36, 4  ;;  %v415_v42 = vrot.slane %v413_v38, 5  ;;  %v747_v54 = vrot.slane %v745_v44, 4  ;;  %v421_v57 = vshll.u32 %v2486_v49, 16 }
  0x36   : > { %v411_v41 = vrot.slane %v410_v37, 4  ;;  %v431_v58 = vshrl.u32 %v2489_v50, 16  ;;  %v427_v59 = vshll.u32 %v2489_v50, 16  ;;  %v420_v63 = vrot.slane %v418_v56, 4 }
  0x37   : > { %1274 = vrot.lane.b32.xlu0 %v2386_v11, %s2269_s6  ;;  %v406_v47 = vsel %vm2366_vm5, %v401_v40, %v405_v31  ;;  %v749_v62 = vsel %vm2331_vm4, %v747_v54, %v748_v55  ;;  %v423_v7 = vrot.slane %v421_v57, 5  ;;  %v1641_v12 = vsel %vm1639_vm6, %v2246_v60, 0  ;;  %v241_v55 = vld [vmem:[%s2309_s20 + $0x64] sm:$0xf] }
  0x38   : > { %988 = vrot.lane.b32.xlu1 %v2093_v43, %s2265_s24  ;;  %v2477_v43 = vcombine.low %v2447_v15, %v232_v0  ;;  %v416_v48 = vsel %vm2366_vm5, %v411_v41, %v415_v42  ;;  %v429_v8 = vrot.slane %v427_v59, 5  ;;  %v437_v14 = vshll.u32 %v236_v2, 16  ;;  %2175 = vmatpush3.bf16.msra.mxu0 %v1641_v12 }
  0x39   : > { %v2096_v53 = vcombine.low %v406_v47, %v416_v48  ;;  %2213 = vmatpush3.bf16.msra.mxu1 %v1641_v12  ;;  %v752_v19 = vrot.slane %v2489_v50, 5  ;;  %v442_v20 = vshrl.u32 %v237_v6, 16  ;;  %v445_v22 = vshll.u32 %v237_v6, 16 }
  0x3a   : > { %v439_v17 = vrot.slane %v437_v14, 5  ;;  %v455_v26 = vshrl.u32 %v238_v16, 16  ;;  %v451_v1 = vshll.u32 %v238_v16, 16  ;;  %v2520_v3 = vcombine.low %v2486_v49, %v2489_v50 }
  0x3b   : > { %1276 = vrot.lane.b32.xlu0 %v2110_v9, %s2269_s6  ;;  %v2063_v27 = vrot.slane %v2486_v49, 9  ;;  %v754_v28 = vrot.slane %v752_v19, 4  ;;  %v447_v31 = vrot.slane %v445_v22, 5  ;;  %v461_v41 = vshll.u32 %v239_v35, 16 }
  0x3c   : > { %990 = vrot.lane.b32.xlu1 %v2094_v51, %s2265_s24  ;;  %v457_v34 = vrot.slane %v455_v26, 4  ;;  %v2541_v49 = vcombine.low %v237_v6, %v238_v16  ;;  %v759_v50 = vrot.slane %v238_v16, 5  ;;  %v2064_v56 = vrot.slane %v237_v6, 9 }
  0x3d   : > { %v753_v37 = vsel %vm2331_vm4, %v2063_v27, %v752_v19  ;;  %v463_v48 = vrot.slane %v461_v41, 5  ;;  %v762_v57 = vrot.slane %v239_v35, 5  ;;  %v2566_v19 = vld [vmem:[%s2309_s20 + $0x70] sm:$0xf] }
  0x3e   : > { %v761_v59 = vrot.slane %v759_v50, 4  ;;  %v503_v27 = vshrl.u32 %v2566_v19, 16 }
  0x3f   : > { %1068 = vrot.lane.b32.xlu0 %v2386_v11, %s2264_s23  ;;  %v2095_v11 = vcombine.low %v382_v29, %v392_v30  ;;  %v755_v29 = vrot.slane %v236_v2, 5  ;;  %v444_v30 = vrot.slane %v442_v20, 4  ;;  %v760_v2 = vsel %vm2331_vm4, %v2064_v56, %v759_v50 }
  0x40   : > { %1070 = vrot.lane.b32.xlu1 %v2110_v9, %s2264_s23 }
  0x41   : > { %v756_v38 = vsel %vm2331_vm4, %v754_v28, %v755_v29  ;;  %v499_v28 = vshll.u32 %v2566_v19, 16 }
  0x42   : > { %v2113_v42 = vcombine.low %v753_v37, %v756_v38  ;;  %v505_v37 = vrot.slane %v503_v27, 4  ;;  %v245_v38 = vld [vmem:[%s2309_s20 + $0x74] sm:$0x1] }
  0x43   : > { %1103 = vrot.lane.b32.xlu0 %v2422_v45, %s2262_s21 }
  0x44   : > { %1105 = vrot.lane.b32.xlu1 %v2456_v25, %s2262_s21 }
  0x47   : > { %1138 = vrot.lane.b32.xlu0 %v2094_v51, %s2266_s29  ;;  %v2062_v51 = vrot.slane %v2447_v15, 9  ;;  %v424_v15 = vor.u32 %v423_v7, %v420_v63  ;;  %v475_v63 = vshll.u32 %v241_v55, 16  ;;  %v763_v7 = vsel %vm2331_vm4, %v761_v59, %v762_v57 }
  0x48   : > { %1140 = vrot.lane.b32.xlu1 %v2095_v11, %s2266_s29  ;;  %v773_v57 = vrot.slane %v2566_v19, 5 }
  0x49   : > { %v746_v61 = vsel %vm2331_vm4, %v2062_v51, %v745_v44  ;;  %v425_v23 = vrot.slane %v424_v15, 4  ;;  %v477_v12 = vrot.slane %v475_v63, 5  ;;  %v2114_v15 = vcombine.low %v760_v2, %v763_v7 }
  0x4a   : > { %v2112_v5 = vcombine.low %v746_v61, %v749_v62  ;;  %v479_v62 = vshrl.u32 %v241_v55, 16  ;;  %v776_v2 = vrot.slane %v245_v38, 5 }
  0x4b   : > { %1173 = vrot.lane.b32.xlu0 %v2110_v9, %s2263_s22  ;;  %v433_v9 = vrot.slane %v431_v58, 4  ;;  %v430_v32 = vsel %vm2366_vm5, %v425_v23, %v429_v8  ;;  %v766_v23 = vrot.slane %v241_v55, 5 }
  0x4c   : > { %1175 = vrot.lane.b32.xlu1 %v2111_v39, %s2263_s22  ;;  %v481_v14 = vrot.slane %v479_v62, 4 }
  0x4d   : > { %v434_v0 = vor.u32 %v433_v9, %v429_v8 }
  0x4e   : > { %v482_v16 = vor.u32 %v481_v14, %v477_v12 }
  0x4f   : > { %1208 = vrot.lane.b32.xlu0 %v2456_v25, %s2267_s30  ;;  %v435_v24 = vrot.slane %v434_v0, 4 }
  0x50   : > { %1210 = vrot.lane.b32.xlu1 %v2477_v43, %s2267_s30  ;;  %v483_v26 = vrot.slane %v482_v16, 4 }
  0x51   : > { %v440_v33 = vsel %vm2366_vm5, %v435_v24, %v439_v17  ;;  %v2563_v17 = vld [vmem:[%s2309_s20 + $0x6c] sm:$0xf] }
  0x52   : > { %v2097_v36 = vcombine.low %v430_v32, %v440_v33  ;;  %v490_v24 = vshrl.u32 %v2563_v17, 16  ;;  %v768_v32 = vrot.slane %v766_v23, 4  ;;  %v2604_v56 = vcombine.low %v2563_v17, %v2566_v19 }
  0x53   : > { %1243 = vrot.lane.b32.xlu0 %v2095_v11, %s2268_s5  ;;  %v2066_v63 = vrot.slane %v2563_v17, 9 }
  0x54   : > { %1245 = vrot.lane.b32.xlu1 %v2096_v53, %s2268_s5 }
  0x57   : > { %1278 = vrot.lane.b32.xlu0 %v2111_v39, %s2269_s6 }
  0x58   : > { %992 = vrot.lane.b32.xlu1 %v2095_v11, %s2265_s24  ;;  %v453_v11 = vrot.slane %v451_v1, 5  ;;  %v493_v1 = vshll.u32 %v2563_v17, 16 }
  0x5a   : > { %v458_v40 = vor.u32 %v457_v34, %v453_v11  ;;  %v495_v35 = vrot.slane %v493_v1, 5 }
  0x5b   : > { %1280 = vrot.lane.b32.xlu0 %v2112_v5, %s2269_s6 }
  0x5c   : > { %994 = vrot.lane.b32.xlu1 %v2096_v53, %s2265_s24  ;;  %v459_v47 = vrot.slane %v458_v40, 4 }
  0x5e   : > { %v464_v54 = vsel %vm2366_vm5, %v459_v47, %v463_v48  ;;  %v509_v47 = vshll.u32 %v245_v38, 16 }
  0x5f   : > { %1072 = vrot.lane.b32.xlu0 %v2111_v39, %s2264_s23  ;;  %v448_v39 = vor.u32 %v447_v31, %v444_v30 }
  0x60   : > { %1074 = vrot.lane.b32.xlu1 %v2112_v5, %s2264_s23 }
  0x61   : > { %v449_v44 = vrot.slane %v448_v39, 4 }
  0x63   : > { %1107 = vrot.lane.b32.xlu0 %v2477_v43, %s2262_s21  ;;  %v454_v51 = vsel %vm2366_vm5, %v449_v44, %v453_v11  ;;  %v492_v11 = vrot.slane %v490_v24, 4 }
  0x64   : > { %1109 = vrot.lane.b32.xlu1 %v2520_v3, %s2262_s21  ;;  %v2098_v58 = vcombine.low %v454_v51, %v464_v54 }
  0x67   : > { %1142 = vrot.lane.b32.xlu0 %v2096_v53, %s2266_s29  ;;  %v240_v53 = vld [vmem:[%s2309_s20 + $0x60] sm:$0xf] }
  0x68   : > { %1144 = vrot.lane.b32.xlu1 %v2097_v36, %s2266_s29  ;;  %v466_v60 = vshrl.u32 %v240_v53, 16  ;;  %v469_v61 = vshll.u32 %v240_v53, 16  ;;  %v2575_v29 = vcombine.low %v240_v53, %v241_v55  ;;  %v2065_v30 = vrot.slane %v240_v53, 9 }
  0x69   : > { %v511_v53 = vrot.slane %v509_v47, 5 }
  0x6a   : > { %v468_v8 = vrot.slane %v466_v60, 4  ;;  %v471_v9 = vrot.slane %v469_v61, 5  ;;  %v767_v40 = vsel %vm2331_vm4, %v2065_v30, %v766_v23  ;;  %v2612_v60 = vld [vmem:[%s2309_s20 + $0x78] sm:$0xf]  ;;  %v2615_v61 = vld [vmem:[%s2309_s20 + $0x7c] sm:$0xf] }
  0x6b   : > { %1177 = vrot.lane.b32.xlu0 %v2112_v5, %s2263_s22  ;;  %v242_v5 = vld [vmem:[%s2309_s20 + $0x68] sm:$0x1]  ;;  %v527_v14 = vshrl.u32 %v2615_v61, 16  ;;  %v2670_v18 = vcombine.low %v2612_v60, %v2615_v61  ;;  %v2067_v21 = vrot.slane %v2612_v60, 9 }
  0x6c   : > { %1179 = vrot.lane.b32.xlu1 %v2113_v42, %s2263_s22  ;;  %v472_v0 = vor.u32 %v471_v9, %v468_v8  ;;  %v485_v6 = vshll.u32 %v242_v5, 16  ;;  %v769_v33 = vrot.slane %v242_v5, 5  ;;  %v775_v9 = vrot.slane %v773_v57, 4 }
  0x6d   : > { %v514_v5 = vshrl.u32 %v2612_v60, 16  ;;  %v529_v24 = vrot.slane %v527_v14, 4 }
  0x6e   : > { %v473_v20 = vrot.slane %v472_v0, 4  ;;  %v487_v22 = vrot.slane %v485_v6, 5  ;;  %v770_v41 = vsel %vm2331_vm4, %v768_v32, %v769_v33  ;;  %v774_v6 = vsel %vm2331_vm4, %v2066_v63, %v773_v57  ;;  %v2646_v32 = vld [vmem:[%s2309_s20 + $0x84] sm:$0xf]  ;;  %v2649_v33 = vld [vmem:[%s2309_s20 + $0x88] sm:$0xf] }
  0x6f   : > { %1212 = vrot.lane.b32.xlu0 %v2520_v3, %s2267_s30  ;;  %v2593_v48 = vcombine.low %v767_v40, %v770_v41  ;;  %v777_v16 = vsel %vm2331_vm4, %v775_v9, %v776_v2  ;;  %v516_v17 = vrot.slane %v514_v5, 4  ;;  %v551_v41 = vshrl.u32 %v2649_v33, 16  ;;  %v2682_v2 = vld [vmem:[%s2309_s20 + $0x8c] sm:$0x1] }
  0x70   : > { %1214 = vrot.lane.b32.xlu1 %v2541_v49, %s2267_s30  ;;  %v478_v31 = vsel %vm2366_vm5, %v473_v20, %v477_v12  ;;  %v488_v34 = vsel %vm2366_vm5, %v483_v26, %v487_v22  ;;  %v517_v12 = vshll.u32 %v2612_v60, 16  ;;  %v248_v22 = vld [vmem:[%s2309_s20 + $0x80] sm:$0x1]  ;;  %v2640_v26 = vcombine.low %v774_v6, %v777_v16 }
  0x71   : > { %v2099_v39 = vcombine.low %v478_v31, %v488_v34  ;;  %v557_v16 = vshll.u32 %v2682_v2, 16 }
  0x72   : > { %v519_v19 = vrot.slane %v517_v12, 5 }
  0x73   : > { %1247 = vrot.lane.b32.xlu0 %v2097_v36, %s2268_s5 }
  0x74   : > { %1249 = vrot.lane.b32.xlu1 %v2098_v58, %s2268_s5  ;;  %v520_v27 = vor.u32 %v519_v19, %v516_v17 }
  0x76   : > { %v521_v34 = vrot.slane %v520_v27, 4 }
  0x77   : > { %1282 = vrot.lane.b32.xlu0 %v2113_v42, %s2269_s6 }
  0x78   : > { %996 = vrot.lane.b32.xlu1 %v2097_v36, %s2265_s24  ;;  %v501_v36 = vrot.slane %v499_v28, 5  ;;  %v533_v28 = vshll.u32 %v248_v22, 16 }
  0x7a   : > { %v506_v44 = vor.u32 %v505_v37, %v501_v36  ;;  %v541_v37 = vshll.u32 %v2646_v32, 16 }
  0x7b   : > { %1284 = vrot.lane.b32.xlu0 %v2114_v15, %s2269_s6 }
  0x7c   : > { %998 = vrot.lane.b32.xlu1 %v2098_v58, %s2265_s24  ;;  %v507_v54 = vrot.slane %v506_v44, 4 }
  0x7e   : > { %v512_v59 = vsel %vm2366_vm5, %v507_v54, %v511_v53 }
  0x7f   : > { %1076 = vrot.lane.b32.xlu0 %v2113_v42, %s2264_s23  ;;  %v496_v42 = vor.u32 %v495_v35, %v492_v11  ;;  %v780_v11 = vrot.slane %v2615_v61, 5  ;;  %v535_v35 = vrot.slane %v533_v28, 5  ;;  %v559_v28 = vrot.slane %v557_v16, 5 }
  0x80   : > { %1078 = vrot.lane.b32.xlu1 %v2114_v15, %s2264_s23 }
  0x81   : > { %v497_v51 = vrot.slane %v496_v42, 4  ;;  %v547_v42 = vshll.u32 %v2649_v33, 16  ;;  %v781_v12 = vsel %vm2331_vm4, %v2067_v21, %v780_v11 }
  0x83   : > { %1111 = vrot.lane.b32.xlu0 %v2541_v49, %s2262_s21 }
  0x84   : > { %1113 = vrot.lane.b32.xlu1 %v2575_v29, %s2262_s21 }
  0x86   : > { %v2597_v55 = vpop.permute.xlu1 %1101 }
  0x87   : > { %1146 = vrot.lane.b32.xlu0 %v2098_v58, %s2266_s29  ;;  %v2595_v50 = vpop.permute.xlu0 %1099  ;;  %v502_v58 = vsel %vm2366_vm5, %v497_v51, %v501_v36  ;;  %v538_v36 = vshrl.u32 %v2646_v32, 16 }
  0x88   : > { %1148 = vrot.lane.b32.xlu1 %v2099_v39, %s2266_s29  ;;  %v2624_v8 = vcombine.low %v502_v58, %v512_v59  ;;  %v543_v58 = vrot.slane %v541_v37, 5  ;;  %v549_v59 = vrot.slane %v547_v42, 5  ;;  %v790_v42 = vrot.slane %v2682_v2, 5 }
  0x89   : > { %v540_v53 = vrot.slane %v538_v36, 4 }
  0x8b   : > { %1181 = vrot.lane.b32.xlu0 %v2114_v15, %s2263_s22  ;;  %v523_v15 = vshll.u32 %v2615_v61, 16  ;;  %v553_v61 = vrot.slane %v551_v41, 4  ;;  %v2739_v41 = vld [vmem:[%s2309_s20 + $0x94] sm:$0xf] }
  0x8c   : > { %1183 = vrot.lane.b32.xlu1 %v2593_v48, %s2263_s22 }
  0x8d   : > { %v2619_v62 = vpop.permute.xlu0 %1169  ;;  %v525_v23 = vrot.slane %v523_v15, 5  ;;  %v554_v6 = vor.u32 %v553_v61, %v549_v59  ;;  %v254_v61 = vld [vmem:[%s2309_s20 + $0x98] sm:$0x1] }
  0x8f   : > { %1216 = vrot.lane.b32.xlu0 %v2575_v29, %s2267_s30  ;;  %v530_v31 = vor.u32 %v529_v24, %v525_v23  ;;  %v526_v54 = vsel %vm2366_vm5, %v521_v34, %v525_v23  ;;  %v2724_v34 = vcombine.low %v2646_v32, %v2649_v33 }
  0x90   : > { %1218 = vrot.lane.b32.xlu1 %v2604_v56, %s2267_s30  ;;  %v1065_v7 = vpop.permute.xlu1 %1064 }
  0x91   : > { %v531_v40 = vrot.slane %v530_v31, 4 }
  0x93   : > { %1251 = vrot.lane.b32.xlu0 %v2099_v39, %s2268_s5 }
  0x94   : > { %1253 = vrot.lane.b32.xlu1 %v2624_v8, %s2268_s5  ;;  %v1067_v0 = vpop.permute.xlu1 %1066 }
  0x95   : > { %v985_v20 = vpop.permute.xlu0 %984 }
  0x96   : > { %v1309_v38 = vsel %vm1306_vm7, %v2075_v46, %v985_v20  ;;  %v783_v46 = vrot.slane %v248_v22, 5 }
  0x97   : > { %1286 = vrot.lane.b32.xlu0 %v2593_v48, %s2269_s6  ;;  %v1357_v51 = vsel %vm1355_vm8, %v1309_v38, %v1065_v7  ;;  %v2733_v38 = vld [vmem:[%s2309_s20 + $0x90] sm:$0xf] }
  0x98   : > { %1000 = vrot.lane.b32.xlu1 %v2099_v39, %s2265_s24  ;;  %v2643_v1 = vpop.permute.xlu1 %1171  ;;  %v1390_v7 = vsel %vm1388_vm9, %v1357_v51, %v2595_v50  ;;  %v562_v21 = vshrl.u32 %v2733_v38, 16 }
  0x99   : > { %v987_v30 = vpop.permute.xlu0 %986 }
  0x9a   : > { %v1312_v47 = vsel %vm1306_vm7, %v2326_v10, %v987_v30  ;;  %v782_v10 = vrot.slane %v780_v11, 4 }
  0x9b   : > { %1288 = vrot.lane.b32.xlu0 %v2640_v26, %s2269_s6  ;;  %v1359_v60 = vsel %vm1355_vm8, %v1312_v47, %v1067_v0  ;;  %v544_v0 = vor.u32 %v543_v58, %v540_v53 }
  0x9c   : > { %1002 = vrot.lane.b32.xlu1 %v2624_v8, %s2265_s24  ;;  %v784_v14 = vsel %vm2331_vm4, %v782_v10, %v783_v46  ;;  %v1392_v50 = vsel %vm1388_vm9, %v1359_v60, %v2597_v55  ;;  %v565_v46 = vshll.u32 %v2733_v38, 16  ;;  %v571_v10 = vshll.u32 %v2739_v41, 16 }
  0x9d   : > { %v1135_v39 = vpop.permute.xlu0 %1134  ;;  %v2708_v55 = vcombine.low %v781_v12, %v784_v14  ;;  %v545_v27 = vrot.slane %v544_v0, 4  ;;  %v581_v12 = vshll.u32 %v254_v61, 16 }
  0x9e   : > { %v1137_v44 = vpop.permute.xlu1 %1136  ;;  %v1423_v9 = vsel %vm1421_vm10, %v1390_v7, %v1135_v39  ;;  %v567_v58 = vrot.slane %v565_v46, 5  ;;  %v573_v60 = vrot.slane %v571_v10, 5 }
  0x9f   : > { %1080 = vrot.lane.b32.xlu0 %v2593_v48, %s2264_s23  ;;  %v536_v48 = vsel %vm2366_vm5, %v531_v40, %v535_v35  ;;  %v1456_v19 = vsel %vm1454_vm11, %v1423_v9, %v2619_v62  ;;  %v1425_v20 = vsel %vm1421_vm10, %v1392_v50, %v1137_v44  ;;  %v555_v62 = vrot.slane %v554_v6, 4  ;;  %v2775_v6 = vld [vmem:[%s2309_s20 + $0xa0] sm:$0xf] }
  0xa0   : > { %1082 = vrot.lane.b32.xlu1 %v2640_v26, %s2264_s23  ;;  %v2691_v5 = vcombine.low %v526_v54, %v536_v48  ;;  %v1458_v31 = vsel %vm1454_vm11, %v1425_v20, %v2643_v1  ;;  %v787_v35 = vrot.slane %v2649_v33, 5  ;;  %v550_v1 = vsel %vm2366_vm5, %v545_v27, %v549_v59 }
  0xa1   : > { %v1205_v57 = vpop.permute.xlu0 %1204  ;;  %v2068_v33 = vrot.slane %v2646_v32, 9  ;;  %v575_v54 = vshrl.u32 %v2739_v41, 16  ;;  %v564_v48 = vrot.slane %v562_v21, 4  ;;  %v595_v27 = vshll.u32 %v2775_v6, 16 }
  0xa2   : > { %v1207_v63 = vpop.permute.xlu1 %1206  ;;  %v1489_v22 = vsel %vm1487_vm12, %v1456_v19, %v1205_v57  ;;  %v789_v47 = vrot.slane %v787_v35, 4  ;;  %v794_v19 = vrot.slane %v2739_v41, 5 }
  0xa3   : > { %1115 = vrot.lane.b32.xlu0 %v2604_v56, %s2262_s21  ;;  %v1491_v11 = vsel %vm1487_vm12, %v1458_v31, %v1207_v63  ;;  %v788_v32 = vsel %vm2331_vm4, %v2068_v33, %v787_v35  ;;  %v577_v63 = vrot.slane %v575_v54, 4  ;;  %v568_v9 = vor.u32 %v567_v58, %v564_v48 }
  0xa4   : > { %1117 = vrot.lane.b32.xlu1 %v2670_v18, %s2262_s21  ;;  %v791_v57 = vsel %vm2331_vm4, %v789_v47, %v790_v42  ;;  %v797_v35 = vrot.slane %v254_v61, 5 }
  0xa5   : > { %v1240_v15 = vpop.permute.xlu0 %1239  ;;  %v2767_v7 = vcombine.low %v788_v32, %v791_v57  ;;  %v578_v50 = vor.u32 %v577_v63, %v573_v60  ;;  %v569_v16 = vrot.slane %v568_v9, 4 }
  0xa6   : > { %v1242_v17 = vpop.permute.xlu1 %1241  ;;  %v1522_v23 = vsel %vm1520_vm13, %v1489_v22, %v1240_v15  ;;  %v2772_v15 = vld [vmem:[%s2309_s20 + $0x9c] sm:$0xf] }
  0xa7   : > { %1150 = vrot.lane.b32.xlu0 %v2624_v8, %s2266_s29  ;;  %v1524_v36 = vsel %vm1520_vm13, %v1491_v11, %v1242_v17  ;;  %v583_v17 = vrot.slane %v581_v12, 5  ;;  %v579_v22 = vrot.slane %v578_v50, 4  ;;  %v574_v31 = vsel %vm2366_vm5, %v569_v16, %v573_v60 }
  0xa8   : > { %1152 = vrot.lane.b32.xlu1 %v2691_v5, %s2266_s29  ;;  %v796_v11 = vrot.slane %v794_v19, 4 }
  0xa9   : > { %v1275_v24 = vpop.permute.xlu0 %1274 }
  0xaa   : > { %v2711_v30 = vpop.permute.xlu1 %988  ;;  %v1555_v8 = vsel %vm1553_vm14, %v1522_v23, %v1275_v24  ;;  %v589_v23 = vshll.u32 %v2772_v15, 16  ;;  %v599_v24 = vshrl.u32 %v2775_v6, 16 }
  0xab   : > { %1185 = vrot.lane.b32.xlu0 %v2640_v26, %s2263_s22  ;;  %2176 = vmatprep.mubr.msk.bf16.mxu0 %vm1606_vm15, %v1555_v8  ;;  %v560_v26 = vsel %vm2366_vm5, %v555_v62, %v559_v28  ;;  %v2790_v28 = vcombine.low %v2733_v38, %v2739_v41  ;;  %v2069_v8 = vrot.slane %v2733_v38, 9  ;;  %v1315_v38 = vsel %vm1306_vm7, %v2321_v4, %v2711_v30 }
  0xac   : > { %1187 = vrot.lane.b32.xlu1 %v2708_v55, %s2263_s22  ;;  %v2748_v44 = vcombine.low %v550_v1, %v560_v26  ;;  %v584_v1 = vsel %vm2366_vm5, %v579_v22, %v583_v17  ;;  %v591_v26 = vrot.slane %v589_v23, 5  ;;  %v601_v41 = vrot.slane %v599_v24, 4  ;;  %v2856_v22 = vld [vmem:[%s2309_s20 + $0xa8] sm:$0xf] }
  0xad   : > { %v1277_v37 = vpop.permute.xlu0 %1276  ;;  %v2810_v47 = vcombine.low %v574_v31, %v584_v1  ;;  %v795_v21 = vsel %vm2331_vm4, %v2069_v8, %v794_v19  ;;  %v798_v4 = vsel %vm2331_vm4, %v796_v11, %v797_v35  ;;  %v801_v17 = vrot.slane %v2775_v6, 5 }
  0xae   : > { %v2735_v39 = vpop.permute.xlu1 %990  ;;  %v1557_v40 = vsel %vm1553_vm14, %v1524_v36, %v1277_v37  ;;  %v2830_v60 = vcombine.low %v795_v21, %v798_v4  ;;  %v610_v11 = vshrl.u32 %v2856_v22, 16  ;;  %v613_v35 = vshll.u32 %v2856_v22, 16 }
  0xaf   : > { %1220 = vrot.lane.b32.xlu0 %v2670_v18, %s2267_s30  ;;  %2177 = vmatmul.mubr.msk.bf16.vlgmr.msra.gmra.mrb[0].mxu0 %vm1606_vm15, %v1557_v40  ;;  %v597_v40 = vrot.slane %v595_v27, 5  ;;  %v1318_v48 = vsel %vm1306_vm7, %v2422_v45, %v2735_v39  ;;  %v2862_v27 = vld [vmem:[%s2309_s20 + $0xac] sm:$0xf]  ;;  %v803_v31 = vrot.slane %v801_v17, 4 }
  0xb0   : > { %1222 = vrot.lane.b32.xlu1 %v2724_v34, %s2267_s30  ;;  %v619_v1 = vshll.u32 %v2862_v27, 16 }
  0xb1   : > { %v1069_v51 = vpop.permute.xlu0 %1068  ;;  %v602_v32 = vor.u32 %v601_v41, %v597_v40  ;;  %v615_v41 = vrot.slane %v613_v35, 5 }
  0xb2   : > { %v2754_v53 = vpop.permute.xlu1 %1070  ;;  %v1361_v42 = vsel %vm1355_vm8, %v1315_v38, %v1069_v51  ;;  %v260_v38 = vld [vmem:[%s2309_s20 + $0xb0] sm:$0x1] }
  0xb3   : > { %1255 = vrot.lane.b32.xlu0 %v2691_v5, %s2268_s5  ;;  %v629_v4 = vshll.u32 %v260_v38, 16 }
  0xb4   : > { %1257 = vrot.lane.b32.xlu1 %v2748_v44, %s2268_s5 }
  0xb5   : > { %v1104_v59 = vpop.permute.xlu0 %1103 }
  0xb6   : > { %v1106_v2 = vpop.permute.xlu1 %1105  ;;  %v1394_v54 = vsel %vm1388_vm9, %v1361_v42, %v1104_v59  ;;  %v1363_v59 = vsel %vm1355_vm8, %v1318_v48, %v2754_v53  ;;  %v621_v42 = vrot.slane %v619_v1, 5  ;;  %v2898_v48 = vld [vmem:[%s2309_s20 + $0xb8] sm:$0xf] }
  0xb7   : > { %1290 = vrot.lane.b32.xlu0 %v2708_v55, %s2269_s6  ;;  %v1396_v9 = vsel %vm1388_vm9, %v1363_v59, %v1106_v2  ;;  %v631_v59 = vrot.slane %v629_v4, 5 }
  0xb8   : > { %1004 = vrot.lane.b32.xlu1 %v2691_v5, %s2265_s24  ;;  %v586_v5 = vshrl.u32 %v2772_v15, 16 }
  0xb9   : > { %v1139_v14 = vpop.permute.xlu0 %1138 }
  0xba   : > { %v1141_v0 = vpop.permute.xlu1 %1140  ;;  %v588_v36 = vrot.slane %v586_v5, 4  ;;  %v1427_v51 = vsel %vm1421_vm10, %v1394_v54, %v1139_v14  ;;  %v603_v14 = vrot.slane %v602_v32, 4 }
  0xbb   : > { %1292 = vrot.lane.b32.xlu0 %v2767_v7, %s2269_s6 }
  0xbc   : > { %1006 = vrot.lane.b32.xlu1 %v2748_v44, %s2265_s24  ;;  %v592_v30 = vor.u32 %v591_v26, %v588_v36 }
  0xbd   : > { %v1174_v20 = vpop.permute.xlu0 %1173 }
  0xbe   : > { %v1176_v62 = vpop.permute.xlu1 %1175  ;;  %v1460_v58 = vsel %vm1454_vm11, %v1427_v51, %v1174_v20  ;;  %v593_v12 = vrot.slane %v592_v30, 4  ;;  %v2895_v51 = vld [vmem:[%s2309_s20 + $0xb4] sm:$0xf] }
  0xbf   : > { %1084 = vrot.lane.b32.xlu0 %v2708_v55, %s2264_s23  ;;  %v2800_v55 = vld [vmem:[%s2309_s20 + $0xa4] sm:$0x1] }
  0xc0   : > { %1086 = vrot.lane.b32.xlu1 %v2767_v7, %s2264_s23  ;;  %v605_v46 = vshll.u32 %v2800_v55, 16  ;;  %v598_v20 = vsel %vm2366_vm5, %v593_v12, %v597_v40  ;;  %v612_v40 = vrot.slane %v610_v11, 4  ;;  %v643_v12 = vshll.u32 %v2898_v48, 16 }
  0xc1   : > { %v1209_v37 = vpop.permute.xlu0 %1208 }
  0xc2   : > { %v1211_v33 = vpop.permute.xlu1 %1210  ;;  %v1493_v61 = vsel %vm1487_vm12, %v1460_v58, %v1209_v37  ;;  %v607_v63 = vrot.slane %v605_v46, 5  ;;  %v623_v37 = vshrl.u32 %v2862_v27, 16 }
  0xc3   : > { %1119 = vrot.lane.b32.xlu0 %v2724_v34, %s2262_s21 }
  0xc4   : > { %1121 = vrot.lane.b32.xlu1 %v2790_v28, %s2262_s21  ;;  %v625_v21 = vrot.slane %v623_v37, 4 }
  0xc5   : > { %v1244_v10 = vpop.permute.xlu0 %1243 }
  0xc6   : > { %v1246_v57 = vpop.permute.xlu1 %1245  ;;  %v1526_v45 = vsel %vm1520_vm13, %v1493_v61, %v1244_v10  ;;  %v616_v10 = vor.u32 %v615_v41, %v612_v40  ;;  %v626_v32 = vor.u32 %v625_v21, %v621_v42  ;;  %v808_v61 = vrot.slane %v2862_v27, 5 }
  0xc7   : > { %1154 = vrot.lane.b32.xlu0 %v2748_v44, %s2266_s29  ;;  %v1429_v44 = vsel %vm1421_vm10, %v1396_v9, %v1141_v0  ;;  %v2847_v0 = vcombine.low %v2772_v15, %v2775_v6  ;;  %v2070_v6 = vrot.slane %v2772_v15, 9 }
  0xc8   : > { %1156 = vrot.lane.b32.xlu1 %v2810_v47, %s2266_s29  ;;  %v1462_v16 = vsel %vm1454_vm11, %v1429_v44, %v1176_v62  ;;  %v804_v62 = vrot.slane %v2800_v55, 5  ;;  %v617_v58 = vrot.slane %v616_v10, 4  ;;  %v627_v9 = vrot.slane %v626_v32, 4 }
  0xc9   : > { %v1279_v39 = vpop.permute.xlu0 %1278  ;;  %v1495_v2 = vsel %vm1487_vm12, %v1462_v16, %v1211_v33  ;;  %v802_v15 = vsel %vm2331_vm4, %v2070_v6, %v801_v17  ;;  %v2913_v44 = vcombine.low %v2856_v22, %v2862_v27  ;;  %v811_v17 = vrot.slane %v260_v38, 5 }
  0xca   : > { %v2835_v50 = vpop.permute.xlu1 %992  ;;  %v1559_v53 = vsel %vm1553_vm14, %v1526_v45, %v1279_v39  ;;  %v1528_v19 = vsel %vm1520_vm13, %v1495_v2, %v1246_v57  ;;  %v805_v55 = vsel %vm2331_vm4, %v803_v31, %v804_v62  ;;  %v637_v45 = vshll.u32 %v2895_v51, 16 }
  0xcb   : > { %1189 = vrot.lane.b32.xlu0 %v2767_v7, %s2263_s22  ;;  %2180 = vmatprep.mubr.msk.bf16.mxu0 %vm1606_vm15, %v1559_v53  ;;  %v608_v7 = vsel %vm2366_vm5, %v603_v14, %v607_v63  ;;  %v2890_v54 = vcombine.low %v802_v15, %v805_v55  ;;  %v647_v39 = vshrl.u32 %v2898_v48, 16  ;;  %v2071_v53 = vrot.slane %v2856_v22, 9 }
  0xcc   : > { %1191 = vrot.lane.b32.xlu1 %v2830_v60, %s2263_s22  ;;  %v2871_v8 = vcombine.low %v598_v20, %v608_v7  ;;  %v622_v16 = vsel %vm2366_vm5, %v617_v58, %v621_v42  ;;  %v810_v2 = vrot.slane %v808_v61, 4  ;;  %v632_v20 = vsel %vm2366_vm5, %v627_v9, %v631_v59 }
  0xcd   : > { %v1281_v5 = vpop.permute.xlu0 %1280  ;;  %v639_v7 = vrot.slane %v637_v45, 5  ;;  %v649_v27 = vrot.slane %v647_v39, 4  ;;  %v1321_v22 = vsel %vm1306_vm7, %v2456_v25, %v2835_v50  ;;  %v2933_v31 = vcombine.low %v622_v16, %v632_v20 }
  0xce   : > { %v2858_v23 = vpop.permute.xlu1 %994  ;;  %v1561_v24 = vsel %vm1553_vm14, %v1528_v19, %v1281_v5  ;;  %v809_v11 = vsel %vm2331_vm4, %v2071_v53, %v808_v61  ;;  %v812_v25 = vsel %vm2331_vm4, %v810_v2, %v811_v17  ;;  %v815_v61 = vrot.slane %v2898_v48, 5 }
  0xcf   : > { %1224 = vrot.lane.b32.xlu0 %v2790_v28, %s2267_s30  ;;  %2181 = vmatmul.mubr.msk.bf16.gmra.mrb[4].mxu0 %vm1606_vm15, %v1561_v24  ;;  %v645_v24 = vrot.slane %v643_v12, 5  ;;  %v1324_v40 = vsel %vm1306_vm7, %v2477_v43, %v2858_v23  ;;  %v2953_v42 = vcombine.low %v809_v11, %v812_v25  ;;  %v2072_v17 = vrot.slane %v2895_v51, 9 }
  0xd0   : > { %1226 = vrot.lane.b32.xlu1 %v2847_v0, %s2267_s30 }
  0xd1   : > { %v1073_v36 = vpop.permute.xlu0 %1072  ;;  %v650_v15 = vor.u32 %v649_v27, %v645_v24 }
  0xd2   : > { %v2877_v26 = vpop.permute.xlu1 %1074  ;;  %v1365_v62 = vsel %vm1355_vm8, %v1321_v22, %v1073_v36 }
  0xd3   : > { %1259 = vrot.lane.b32.xlu0 %v2810_v47, %s2268_s5 }
  0xd4   : > { %1261 = vrot.lane.b32.xlu1 %v2871_v8, %s2268_s5 }
  0xd5   : > { %v1108_v33 = vpop.permute.xlu0 %1107 }
  0xd6   : > { %v1110_v46 = vpop.permute.xlu1 %1109  ;;  %v1398_v37 = vsel %vm1388_vm9, %v1365_v62, %v1108_v33  ;;  %v1367_v33 = vsel %vm1355_vm8, %v1324_v40, %v2877_v26  ;;  %v266_v62 = vld [vmem:[%s2309_s20 + $0xc8] sm:$0x1] }
  0xd7   : > { %1294 = vrot.lane.b32.xlu0 %v2830_v60, %s2269_s6  ;;  %v1400_v10 = vsel %vm1388_vm9, %v1367_v33, %v1110_v46  ;;  %v2966_v46 = vld [vmem:[%s2309_s20 + $0xc0] sm:$0xf] }
  0xd8   : > { %1008 = vrot.lane.b32.xlu1 %v2810_v47, %s2265_s24  ;;  %v634_v47 = vshrl.u32 %v2895_v51, 16  ;;  %v824_v53 = vshll.u32 %v2966_v46, 16 }
  0xd9   : > { %v1143_v30 = vpop.permute.xlu0 %1142 }
  0xda   : > { %v1145_v57 = vpop.permute.xlu1 %1144  ;;  %v636_v19 = vrot.slane %v634_v47, 4  ;;  %v1431_v36 = vsel %vm1421_vm10, %v1398_v37, %v1143_v30  ;;  %v2977_v47 = vld [vmem:[%s2309_s20 + $0xc4] sm:$0xf]  ;;  %v826_v27 = vrot.slane %v824_v53, 5 }
  0xdb   : > { %1296 = vrot.lane.b32.xlu0 %v2890_v54, %s2269_s6  ;;  %v1433_v30 = vsel %vm1421_vm10, %v1400_v10, %v1145_v57  ;;  %v2973_v57 = vcombine.low %v2895_v51, %v2898_v48  ;;  %v834_v48 = vshrl.u32 %v2977_v47, 16  ;;  %v830_v16 = vshll.u32 %v2977_v47, 16 }
  0xdc   : > { %1010 = vrot.lane.b32.xlu1 %v2871_v8, %s2265_s24  ;;  %v640_v50 = vor.u32 %v639_v7, %v636_v19  ;;  %v817_v19 = vrot.slane %v815_v61, 4  ;;  %v816_v51 = vsel %vm2331_vm4, %v2072_v17, %v815_v61 }
  0xdd   : > { %v1178_v63 = vpop.permute.xlu0 %1177  ;;  %v836_v22 = vrot.slane %v834_v48, 4 }
  0xde   : > { %v1180_v14 = vpop.permute.xlu1 %1179  ;;  %v1464_v41 = vsel %vm1454_vm11, %v1431_v36, %v1178_v63  ;;  %v641_v4 = vrot.slane %v640_v50, 4  ;;  %v840_v50 = vshll.u32 %v266_v62, 16 }
  0xdf   : > { %1088 = vrot.lane.b32.xlu0 %v2830_v60, %s2264_s23  ;;  %v2923_v60 = vld [vmem:[%s2309_s20 + $0xbc] sm:$0x1]  ;;  %v1466_v58 = vsel %vm1454_vm11, %v1433_v30, %v1180_v14  ;;  %v821_v14 = vshrl.u32 %v2966_v46, 16  ;;  %v2123_v30 = vcombine.low %v2966_v46, %v2977_v47 }
  0xe0   : > { %1090 = vrot.lane.b32.xlu1 %v2890_v54, %s2264_s23  ;;  %v653_v35 = vshll.u32 %v2923_v60, 16  ;;  %v646_v9 = vsel %vm2366_vm5, %v641_v4, %v645_v24 }
  0xe1   : > { %v1213_v5 = vpop.permute.xlu0 %1212  ;;  %v823_v24 = vrot.slane %v821_v14, 4  ;;  %v269_v14 = vld [vmem:[%s2309_s20 + $0xd4] sm:$0x1] }
  0xe2   : > { %v1215_v6 = vpop.permute.xlu1 %1214  ;;  %v1497_v38 = vsel %vm1487_vm12, %v1464_v41, %v1213_v5  ;;  %v655_v21 = vrot.slane %v653_v35, 5  ;;  %v818_v5 = vrot.slane %v2923_v60, 5 }
  0xe3   : > { %1123 = vrot.lane.b32.xlu0 %v2847_v0, %s2262_s21  ;;  %v1499_v59 = vsel %vm1487_vm12, %v1466_v58, %v1215_v6  ;;  %v832_v6 = vrot.slane %v830_v16, 5  ;;  %v827_v37 = vor.u32 %v826_v27, %v823_v24  ;;  %v874_v24 = vshll.u32 %v269_v14, 16 }
  0xe4   : > { %1125 = vrot.lane.b32.xlu1 %v2913_v44, %s2262_s21  ;;  %v819_v60 = vsel %vm2331_vm4, %v817_v19, %v818_v5 }
  0xe5   : > { %v1248_v1 = vpop.permute.xlu0 %1247  ;;  %v837_v25 = vor.u32 %v836_v22, %v832_v6  ;;  %v828_v41 = vrot.slane %v827_v37, 4 }
  0xe6   : > { %v1250_v55 = vpop.permute.xlu1 %1249  ;;  %v1530_v43 = vsel %vm1520_vm13, %v1497_v38, %v1248_v1  ;;  %v3015_v1 = vcombine.low %v816_v51, %v819_v60  ;;  %v842_v38 = vrot.slane %v840_v50, 5 }
  0xe7   : > { %1158 = vrot.lane.b32.xlu0 %v2871_v8, %s2266_s29  ;;  %v651_v8 = vrot.slane %v650_v15, 4  ;;  %v1532_v63 = vsel %vm1520_vm13, %v1499_v59, %v1250_v55  ;;  %v3020_v15 = vld [vmem:[%s2309_s20 + $0xcc] sm:$0xf]  ;;  %v3023_v55 = vld [vmem:[%s2309_s20 + $0xd0] sm:$0xf]  ;;  %v838_v33 = vrot.slane %v837_v25, 4  ;;  %s214_s20 = scalar_lea.vmem %s3234_s4, %s3240_s16 }
  0xe8   : > { %1160 = vrot.lane.b32.xlu1 %v2933_v31, %s2266_s29  ;;  %v858_v10 = vshll.u32 %v3020_v15, 16  ;;  %v2073_v59 = vrot.slane %v2966_v46, 9  ;;  %v876_v25 = vrot.slane %v874_v24, 5 }
  0xe9   : > { %v1283_v23 = vpop.permute.xlu0 %1282  ;;  %v656_v45 = vsel %vm2366_vm5, %v651_v8, %v655_v21  ;;  %v855_v21 = vshrl.u32 %v3020_v15, 16  ;;  %v843_v58 = vsel %vm2366_vm5, %v838_v33, %v842_v38 }
  0xea   : > { %v2958_v26 = vpop.permute.xlu1 %996  ;;  %v1563_v32 = vsel %vm1553_vm14, %v1530_v43, %v1283_v23  ;;  %v2996_v2 = vcombine.low %v646_v9, %v656_v45  ;;  %v868_v43 = vshrl.u32 %v3023_v55, 16  ;;  %v864_v23 = vshll.u32 %v3023_v55, 16 }
  0xeb   : > { %1193 = vrot.lane.b32.xlu0 %v2890_v54, %s2263_s22  ;;  %2184 = vmatprep.mubr.msk.bf16.mxu0 %vm1606_vm15, %v1563_v32  ;;  %v833_v32 = vsel %vm2366_vm5, %v828_v41, %v832_v6  ;;  %v857_v61 = vrot.slane %v855_v21, 4  ;;  %v852_v9 = vrot.slane %v266_v62, 5 }
  0xec   : > { %1195 = vrot.lane.b32.xlu1 %v2953_v42, %s2263_s22  ;;  %v866_v45 = vrot.slane %v864_v23, 5  ;;  %v2124_v46 = vcombine.low %v833_v32, %v843_v58  ;;  %v886_v23 = vrot.slane %v269_v14, 5 }
  0xed   : > { %v1285_v54 = vpop.permute.xlu0 %1284 }
  0xee   : > { %v2984_v39 = vpop.permute.xlu1 %998  ;;  %v1565_v12 = vsel %vm1553_vm14, %v1532_v63, %v1285_v54  ;;  %v860_v63 = vrot.slane %v858_v10, 5 }
  0xef   : > { %1228 = vrot.lane.b32.xlu0 %v2913_v44, %s2267_s30  ;;  %2185 = vmatmul.mubr.msk.bf16.gmra.mrb[8].mxu0 %vm1606_vm15, %v1565_v12  ;;  %v1330_v22 = vsel %vm1306_vm7, %v2541_v49, %v2984_v39 }
  0xf0   : > { %1230 = vrot.lane.b32.xlu1 %v2973_v57, %s2267_s30  ;;  %v861_v16 = vor.u32 %v860_v63, %v857_v61 }
  0xf1   : > { %v1077_v20 = vpop.permute.xlu0 %1076 }
  0xf2   : > { %v3000_v7 = vpop.permute.xlu1 %1078  ;;  %v862_v60 = vrot.slane %v861_v16, 4 }
  0xf3   : > { %1263 = vrot.lane.b32.xlu0 %v2933_v31, %s2268_s5  ;;  %v1371_v62 = vsel %vm1355_vm8, %v1330_v22, %v3000_v7 }
  0xf4   : > { %1265 = vrot.lane.b32.xlu1 %v2996_v2, %s2268_s5 }
  0xf5   : > { %v1112_v11 = vpop.permute.xlu0 %1111 }
  0xf6   : > { %v3011_v35 = vpop.permute.xlu1 %1113 }
  0xf7   : > { %1298 = vrot.lane.b32.xlu0 %v2953_v42, %s2269_s6  ;;  %v1404_v50 = vsel %vm1388_vm9, %v1371_v62, %v3011_v35  ;;  %v2126_v35 = vcombine.low %v3020_v15, %v3023_v55 }
  0xf8   : > { %1012 = vrot.lane.b32.xlu1 %v2933_v31, %s2265_s24  ;;  %v849_v31 = vrot.slane %v2977_v47, 5  ;;  %v870_v47 = vrot.slane %v868_v43, 4 }
  0xf9   : > { %v1147_v36 = vpop.permute.xlu0 %1146 }
  0xfa   : > { %v1149_v40 = vpop.permute.xlu1 %1148  ;;  %v851_v54 = vrot.slane %v849_v31, 4  ;;  %v850_v48 = vsel %vm2331_vm4, %v2073_v59, %v849_v31  ;;  %v871_v5 = vor.u32 %v870_v47, %v866_v45 }
  0xfb   : > { %1300 = vrot.lane.b32.xlu0 %v3015_v1, %s2269_s6 }
  0xfc   : > { %1014 = vrot.lane.b32.xlu1 %v2996_v2, %s2265_s24  ;;  %v853_v19 = vsel %vm2331_vm4, %v851_v54, %v852_v9  ;;  %v872_v37 = vrot.slane %v871_v5, 4 }
  0xfd   : > { %v1182_v4 = vpop.permute.xlu0 %1181 }
  0xfe   : > { %v1184_v8 = vpop.permute.xlu1 %1183  ;;  %v877_v21 = vsel %vm2366_vm5, %v872_v37, %v876_v25 }
  0xff   : > { %1092 = vrot.lane.b32.xlu0 %v2953_v42, %s2264_s23  ;;  %v1327_v42 = vsel %vm1306_vm7, %v2520_v3, %v2958_v26 }
 0x100   : > { %1094 = vrot.lane.b32.xlu1 %v3015_v1, %s2264_s23  ;;  %v1369_v17 = vsel %vm1355_vm8, %v1327_v42, %v1077_v20  ;;  %v2125_v20 = vcombine.low %v850_v48, %v853_v19 }
 0x101   : > { %v1217_v12 = vpop.permute.xlu0 %1216  ;;  %v1402_v27 = vsel %vm1388_vm9, %v1369_v17, %v1112_v11 }
 0x102   : > { %v1219_v53 = vpop.permute.xlu1 %1218  ;;  %v1435_v26 = vsel %vm1421_vm10, %v1402_v27, %v1147_v36  ;;  %v883_v36 = vrot.slane %v3023_v55, 5 }
 0x103   : > { %1127 = vrot.lane.b32.xlu0 %v2973_v57, %s2262_s21  ;;  %v1468_v51 = vsel %vm1454_vm11, %v1435_v26, %v1182_v4 }
 0x104   : > { %1129 = vrot.lane.b32.xlu1 %v2123_v30, %s2262_s21  ;;  %v1501_v11 = vsel %vm1487_vm12, %v1468_v51, %v1217_v12  ;;  %v885_v43 = vrot.slane %v883_v36, 4 }
 0x105   : > { %v1252_v3 = vpop.permute.xlu0 %1251 }
 0x106   : > { %v1254_v6 = vpop.permute.xlu1 %1253  ;;  %v1534_v49 = vsel %vm1520_vm13, %v1501_v11, %v1252_v3  ;;  %v887_v58 = vsel %vm2331_vm4, %v885_v43, %v886_v23 }
 0x107   : > { %1162 = vrot.lane.b32.xlu0 %v2996_v2, %s2266_s29  ;;  %v1437_v2 = vsel %vm1421_vm10, %v1404_v50, %v1149_v40  ;;  %v867_v40 = vsel %vm2366_vm5, %v862_v60, %v866_v45 }
 0x108   : > { %1164 = vrot.lane.b32.xlu1 %v2124_v46, %s2266_s29  ;;  %v1470_v7 = vsel %vm1454_vm11, %v1437_v2, %v1184_v8  ;;  %v2127_v55 = vcombine.low %v867_v40, %v877_v21 }
 0x109   : > { %v1287_v39 = vpop.permute.xlu0 %1286  ;;  %v1503_v38 = vsel %vm1487_vm12, %v1470_v7, %v1219_v53 }
 0x10a   : > { %v1001_v41 = vpop.permute.xlu1 %1000  ;;  %v1567_v33 = vsel %vm1553_vm14, %v1534_v49, %v1287_v39  ;;  %v1536_v10 = vsel %vm1520_vm13, %v1503_v38, %v1254_v6 }
 0x10b   : > { %1197 = vrot.lane.b32.xlu0 %v3015_v1, %s2263_s22  ;;  %2188 = vmatprep.mubr.msk.bf16.mxu0 %vm1606_vm15, %v1567_v33  ;;  %v2074_v1 = vrot.slane %v3020_v15, 9  ;;  %v1333_v13 = vsel %vm1306_vm7, %v2575_v29, %v1001_v41 }
 0x10c   : > { %1199 = vrot.lane.b32.xlu1 %v2125_v20, %s2263_s22 }
 0x10d   : > { %v1289_v31 = vpop.permute.xlu0 %1288  ;;  %v884_v52 = vsel %vm2331_vm4, %v2074_v1, %v883_v36 }
 0x10e   : > { %v1003_v4 = vpop.permute.xlu1 %1002  ;;  %v1569_v8 = vsel %vm1553_vm14, %v1536_v10, %v1289_v31  ;;  %v2128_v59 = vcombine.low %v884_v52, %v887_v58 }
 0x10f   : > { %1232 = vrot.lane.b32.xlu0 %v2123_v30, %s2267_s30  ;;  %2189 = vmatmul.mubr.msk.bf16.gmra.mrb[12].mxu0 %vm1606_vm15, %v1569_v8  ;;  %v1336_v16 = vsel %vm1306_vm7, %v2604_v56, %v1003_v4 }
 0x110   : > { %1234 = vrot.lane.b32.xlu1 %v2126_v35, %s2267_s30 }
 0x111   : > { %v1081_v32 = vpop.permute.xlu0 %1080 }
 0x112   : > { %v1083_v15 = vpop.permute.xlu1 %1082  ;;  %v1373_v14 = vsel %vm1355_vm8, %v1333_v13, %v1081_v32 }
 0x113   : > { %1267 = vrot.lane.b32.xlu0 %v2124_v46, %s2268_s5  ;;  %v1375_v19 = vsel %vm1355_vm8, %v1336_v16, %v1083_v15 }
 0x114   : > { %1269 = vrot.lane.b32.xlu1 %v2127_v55, %s2268_s5 }
 0x115   : > { %v1116_v61 = vpop.permute.xlu0 %1115 }
 0x116   : > { %v1118_v30 = vpop.permute.xlu1 %1117  ;;  %v1406_v53 = vsel %vm1388_vm9, %v1373_v14, %v1116_v61 }
 0x117   : > { %1302 = vrot.lane.b32.xlu0 %v2125_v20, %s2269_s6  ;;  %v1408_v24 = vsel %vm1388_vm9, %v1375_v19, %v1118_v30 }
 0x118   : > { %1304 = vrot.lane.b32.xlu1 %v2128_v59, %s2269_s6 }
 0x119   : > { %v1151_v63 = vpop.permute.xlu0 %1150 }
 0x11a   : > { %v1153_v54 = vpop.permute.xlu1 %1152  ;;  %v1439_v46 = vsel %vm1421_vm10, %v1406_v53, %v1151_v63 }
 0x11b   : > { %v1441_v3 = vsel %vm1421_vm10, %v1408_v24, %v1153_v54 }
 0x11d   : > { %v1186_v9 = vpop.permute.xlu0 %1185 }
 0x11e   : > { %v1188_v45 = vpop.permute.xlu1 %1187  ;;  %v1472_v17 = vsel %vm1454_vm11, %v1439_v46, %v1186_v9 }
 0x11f   : > { %v1474_v22 = vsel %vm1454_vm11, %v1441_v3, %v1188_v45 }
 0x121   : > { %v1221_v47 = vpop.permute.xlu0 %1220 }
 0x122   : > { %v1223_v12 = vpop.permute.xlu1 %1222  ;;  %v1505_v5 = vsel %vm1487_vm12, %v1472_v17, %v1221_v47 }
 0x123   : > { %v1507_v56 = vsel %vm1487_vm12, %v1474_v22, %v1223_v12 }
 0x125   : > { %v1256_v42 = vpop.permute.xlu0 %1255 }
 0x126   : > { %v1258_v48 = vpop.permute.xlu1 %1257  ;;  %v1538_v29 = vsel %vm1520_vm13, %v1505_v5, %v1256_v42 }
 0x127   : > { %v1540_v51 = vsel %vm1520_vm13, %v1507_v56, %v1258_v48 }
 0x129   : > { %v1291_v27 = vpop.permute.xlu0 %1290 }
 0x12a   : > { %v1005_v26 = vpop.permute.xlu1 %1004  ;;  %v1571_v6 = vsel %vm1553_vm14, %v1538_v29, %v1291_v27 }
 0x12b   : > { %2192 = vmatprep.mubr.msk.bf16.mxu1 %vm1606_vm15, %v1571_v6  ;;  %v1339_v7 = vsel %vm1306_vm7, %v2670_v18, %v1005_v26 }
 0x12d   : > { %v1293_v20 = vpop.permute.xlu0 %1292 }
 0x12e   : > { %v1007_v60 = vpop.permute.xlu1 %1006  ;;  %v1573_v62 = vsel %vm1553_vm14, %v1540_v51, %v1293_v20 }
 0x12f   : > { %2193 = vmatmul.mubr.msk.bf16.vlgmr.msra.gmra.mrb[0].mxu1 %vm1606_vm15, %v1573_v62  ;;  %v1342_v31 = vsel %vm1306_vm7, %v2724_v34, %v1007_v60 }
 0x131   : > { %v1085_v11 = vpop.permute.xlu0 %1084 }
 0x132   : > { %v1087_v37 = vpop.permute.xlu1 %1086  ;;  %v1377_v38 = vsel %vm1355_vm8, %v1339_v7, %v1085_v11 }
 0x133   : > { %v1379_v43 = vsel %vm1355_vm8, %v1342_v31, %v1087_v37 }
 0x135   : > { %v1120_v25 = vpop.permute.xlu0 %1119 }
 0x136   : > { %v1122_v50 = vpop.permute.xlu1 %1121  ;;  %v1410_v35 = vsel %vm1388_vm9, %v1377_v38, %v1120_v25 }
 0x137   : > { %v1412_v4 = vsel %vm1388_vm9, %v1379_v43, %v1122_v50 }
 0x139   : > { %v1155_v49 = vpop.permute.xlu0 %1154 }
 0x13a   : > { %v1157_v39 = vpop.permute.xlu1 %1156  ;;  %v1443_v21 = vsel %vm1421_vm10, %v1410_v35, %v1155_v49 }
 0x13b   : > { %v1445_v55 = vsel %vm1421_vm10, %v1412_v4, %v1157_v39 }
 0x13d   : > { %v1190_v36 = vpop.permute.xlu0 %1189 }
 0x13e   : > { %v1192_v2 = vpop.permute.xlu1 %1191  ;;  %v1476_v1 = vsel %vm1454_vm11, %v1443_v21, %v1190_v36 }
 0x13f   : > { %v1478_v58 = vsel %vm1454_vm11, %v1445_v55, %v1192_v2 }
 0x141   : > { %v1225_v41 = vpop.permute.xlu0 %1224 }
 0x142   : > { %v1227_v33 = vpop.permute.xlu1 %1226  ;;  %v1509_v23 = vsel %vm1487_vm12, %v1476_v1, %v1225_v41 }
 0x143   : > { %v1511_v34 = vsel %vm1487_vm12, %v1478_v58, %v1227_v33 }
 0x145   : > { %v1260_v40 = vpop.permute.xlu0 %1259 }
 0x146   : > { %v1262_v10 = vpop.permute.xlu1 %1261  ;;  %v1542_v18 = vsel %vm1520_vm13, %v1509_v23, %v1260_v40 }
 0x147   : > { %v1544_v15 = vsel %vm1520_vm13, %v1511_v34, %v1262_v10 }
 0x149   : > { %v1295_v8 = vpop.permute.xlu0 %1294 }
 0x14a   : > { %v1009_v32 = vpop.permute.xlu1 %1008  ;;  %v1575_v52 = vsel %vm1553_vm14, %v1542_v18, %v1295_v8 }
 0x14b   : > { %2196 = vmatprep.mubr.msk.bf16.mxu1 %vm1606_vm15, %v1575_v52  ;;  %v1345_v46 = vsel %vm1306_vm7, %v2790_v28, %v1009_v32 }
 0x14d   : > { %v1297_v59 = vpop.permute.xlu0 %1296 }
 0x14e   : > { %v1011_v61 = vpop.permute.xlu1 %1010  ;;  %v1577_v30 = vsel %vm1553_vm14, %v1544_v15, %v1297_v59 }
 0x14f   : > { %2197 = vmatmul.mubr.msk.bf16.gmra.mrb[4].mxu1 %vm1606_vm15, %v1577_v30  ;;  %v1348_v24 = vsel %vm1306_vm7, %v2847_v0, %v1011_v61 }
 0x151   : > { %v1089_v63 = vpop.permute.xlu0 %1088 }
 0x152   : > { %v1091_v54 = vpop.permute.xlu1 %1090  ;;  %v1381_v48 = vsel %vm1355_vm8, %v1345_v46, %v1089_v63 }
 0x153   : > { %v1383_v27 = vsel %vm1355_vm8, %v1348_v24, %v1091_v54 }
 0x155   : > { %v1124_v9 = vpop.permute.xlu0 %1123 }
 0x156   : > { %v1126_v45 = vpop.permute.xlu1 %1125  ;;  %v1414_v16 = vsel %vm1388_vm9, %v1381_v48, %v1124_v9 }
 0x157   : > { %v1416_v26 = vsel %vm1388_vm9, %v1383_v27, %v1126_v45 }
 0x159   : > { %v1159_v47 = vpop.permute.xlu0 %1158 }
 0x15a   : > { %v1161_v12 = vpop.permute.xlu1 %1160  ;;  %v1447_v19 = vsel %vm1421_vm10, %v1414_v16, %v1159_v47 }
 0x15b   : > { %v1449_v22 = vsel %vm1421_vm10, %v1416_v26, %v1161_v12 }
 0x15d   : > { %v1194_v13 = vpop.permute.xlu0 %1193 }
 0x15e   : > { %v1196_v14 = vpop.permute.xlu1 %1195  ;;  %v1480_v29 = vsel %vm1454_vm11, %v1447_v19, %v1194_v13 }
 0x15f   : > { %v1482_v20 = vsel %vm1454_vm11, %v1449_v22, %v1196_v14 }
 0x161   : > { %v1229_v53 = vpop.permute.xlu0 %1228 }
 0x162   : > { %v1231_v42 = vpop.permute.xlu1 %1230  ;;  %v1513_v3 = vsel %vm1487_vm12, %v1480_v29, %v1229_v53 }
 0x163   : > { %v1515_v0 = vsel %vm1487_vm12, %v1482_v20, %v1231_v42 }
 0x165   : > { %v1264_v17 = vpop.permute.xlu0 %1263 }
 0x166   : > { %v1266_v5 = vpop.permute.xlu1 %1265  ;;  %v1546_v28 = vsel %vm1520_vm13, %v1513_v3, %v1264_v17 }
 0x167   : > { %v1548_v60 = vsel %vm1520_vm13, %v1515_v0, %v1266_v5 }
 0x169   : > { %v1299_v6 = vpop.permute.xlu0 %1298 }
 0x16a   : > { %v1013_v56 = vpop.permute.xlu1 %1012  ;;  %v1579_v51 = vsel %vm1553_vm14, %v1546_v28, %v1299_v6 }
 0x16b   : > { %2200 = vmatprep.mubr.msk.bf16.mxu1 %vm1606_vm15, %v1579_v51  ;;  %v1351_v38 = vsel %vm1306_vm7, %v2913_v44, %v1013_v56 }
 0x16d   : > { %v1301_v62 = vpop.permute.xlu0 %1300 }
 0x16e   : > { %v1015_v11 = vpop.permute.xlu1 %1014  ;;  %v1581_v37 = vsel %vm1553_vm14, %v1548_v60, %v1301_v62 }
 0x16f   : > { %2201 = vmatmul.mubr.msk.bf16.gmra.mrb[8].mxu1 %vm1606_vm15, %v1581_v37  ;;  %v1354_v21 = vsel %vm1306_vm7, %v2973_v57, %v1015_v11 }
 0x171   : > { %v1093_v25 = vpop.permute.xlu0 %1092 }
 0x172   : > { %v1095_v50 = vpop.permute.xlu1 %1094  ;;  %v1385_v10 = vsel %vm1355_vm8, %v1351_v38, %v1093_v25 }
 0x173   : > { %v1387_v1 = vsel %vm1355_vm8, %v1354_v21, %v1095_v50 }
 0x175   : > { %v1128_v49 = vpop.permute.xlu0 %1127 }
 0x176   : > { %v1130_v39 = vpop.permute.xlu1 %1129  ;;  %v1418_v43 = vsel %vm1388_vm9, %v1385_v10, %v1128_v49 }
 0x177   : > { %v1420_v4 = vsel %vm1388_vm9, %v1387_v1, %v1130_v39 }
 0x179   : > { %v1163_v36 = vpop.permute.xlu0 %1162 }
 0x17a   : > { %v1165_v2 = vpop.permute.xlu1 %1164  ;;  %v1451_v44 = vsel %vm1421_vm10, %v1418_v43, %v1163_v36 }
 0x17b   : > { %v1453_v57 = vsel %vm1421_vm10, %v1420_v4, %v1165_v2 }
 0x17d   : > { %v1198_v41 = vpop.permute.xlu0 %1197 }
 0x17e   : > { %v1200_v33 = vpop.permute.xlu1 %1199  ;;  %v1484_v15 = vsel %vm1454_vm11, %v1451_v44, %v1198_v41 }
 0x17f   : > { %v1486_v34 = vsel %vm1454_vm11, %v1453_v57, %v1200_v33 }
 0x181   : > { %v1233_v7 = vpop.permute.xlu0 %1232 }
 0x182   : > { %v1235_v35 = vpop.permute.xlu1 %1234  ;;  %v2178_v40 = vpop.f32.mrb[0].mxu0  ;;  %v1517_v59 = vsel %vm1487_vm12, %v1484_v15, %v1233_v7 }
 0x183   : > { %1914 = vst [vmem:[%s3165_s12 + $0x10] sm:$0xff] %v2178_v40  ;;  %v1677_v31 = vpop.f32.mrb[1].mxu0  ;;  %v1844_v61 = vmul.f32 %v2178_v40, %v2178_v40  ;;  %v1519_v54 = vsel %vm1487_vm12, %v1486_v34, %v1235_v35 }
 0x184   : > { %1912 = vst [vmem:[%s3165_s12] sm:$0xff] %v1677_v31  ;;  %v2179_v23 = vpop.f32.mrb[2].mxu0  ;;  %v1842_v55 = vmul.f32 %v1677_v31, %v1677_v31 }
 0x185   : > { %1915 = vst [vmem:[%s3165_s12 + $0x18] sm:$0xff] %v2179_v23  ;;  %v1680_v18 = vpop.f32.mrb[3].mxu0  ;;  %v1268_v8 = vpop.permute.xlu0 %1267  ;;  %v1845_v9 = vmul.f32 %v2179_v23, %v2179_v23 }
 0x186   : > { %v1270_v32 = vpop.permute.xlu1 %1269  ;;  %v1804_v52 = vadd.f32 %v1680_v18, %v1677_v31  ;;  %v1843_v58 = vmul.f32 %v1680_v18, %v1680_v18  ;;  %1913 = vst [vmem:[%s3165_s12 + $0x8] sm:$0xff] %v1680_v18  ;;  %v1550_v45 = vsel %vm1520_vm13, %v1517_v59, %v1268_v8 }
 0x187   : > { %v1552_v12 = vsel %vm1520_vm13, %v1519_v54, %v1270_v32 }
 0x188   : > { %v1805_v30 = vadd.f32 %v2178_v40, %v1804_v52  ;;  %v1874_v63 = vadd.f32 %v1843_v58, %v1842_v55 }
 0x189   : > { %v1303_v47 = vpop.permute.xlu0 %1302 }
 0x18a   : > { %v1875_v13 = vadd.f32 %v1874_v63, %v1844_v61  ;;  %v1305_v14 = vpop.permute.xlu1 %1304  ;;  %v1583_v53 = vsel %vm1553_vm14, %v1550_v45, %v1303_v47  ;;  %v1806_v42 = vadd.f32 %v2179_v23, %v1805_v30 }
 0x18b   : > { %v1585_v46 = vsel %vm1553_vm14, %v1552_v12, %v1305_v14  ;;  %2204 = vmatprep.mubr.msk.bf16.mxu1 %vm1606_vm15, %v1583_v53 }
 0x18c   : > { %2205 = vmatmul.mubr.msk.bf16.gmra.mrb[12].mxu1 %vm1606_vm15, %v1585_v46  ;;  %v1876_v48 = vadd.f32 %v1875_v13, %v1845_v9 }
 0x1a2   : > { %v2182_v16 = vpop.f32.mrb[4].mxu0 }
 0x1a3   : > { %1918 = vst [vmem:[%s3165_s12 + $0x30] sm:$0xff] %v2182_v16  ;;  %v1693_v17 = vpop.f32.mrb[5].mxu0  ;;  %v1848_v28 = vmul.f32 %v2182_v16, %v2182_v16 }
 0x1a4   : > { %v1807_v19 = vadd.f32 %v1806_v42, %v1693_v17  ;;  %v1846_v5 = vmul.f32 %v1693_v17, %v1693_v17  ;;  %1916 = vst [vmem:[%s3165_s12 + $0x20] sm:$0xff] %v1693_v17  ;;  %v2183_v24 = vpop.f32.mrb[6].mxu0 }
 0x1a5   : > { %1919 = vst [vmem:[%s3165_s12 + $0x38] sm:$0xff] %v2183_v24  ;;  %v1696_v29 = vpop.f32.mrb[7].mxu0  ;;  %v1849_v56 = vmul.f32 %v2183_v24, %v2183_v24 }
 0x1a6   : > { %v1877_v27 = vadd.f32 %v1876_v48, %v1846_v5  ;;  %v1808_v3 = vadd.f32 %v1807_v19, %v1696_v29  ;;  %v1847_v26 = vmul.f32 %v1696_v29, %v1696_v29  ;;  %1917 = vst [vmem:[%s3165_s12 + $0x28] sm:$0xff] %v1696_v29 }
 0x1a8   : > { %v1809_v6 = vadd.f32 %v2182_v16, %v1808_v3  ;;  %v1878_v22 = vadd.f32 %v1877_v27, %v1847_v26 }
 0x1aa   : > { %v1879_v51 = vadd.f32 %v1878_v22, %v1848_v28  ;;  %v1810_v20 = vadd.f32 %v2183_v24, %v1809_v6 }
 0x1ac   : > { %v1880_v0 = vadd.f32 %v1879_v51, %v1849_v56 }
 0x1c2   : > { %v2186_v60 = vpop.f32.mrb[8].mxu0 }
 0x1c3   : > { %1922 = vst [vmem:[%s3165_s12 + $0x50] sm:$0xff] %v2186_v60  ;;  %v1709_v62 = vpop.f32.mrb[9].mxu0  ;;  %v1852_v2 = vmul.f32 %v2186_v60, %v2186_v60 }
 0x1c4   : > { %v1811_v11 = vadd.f32 %v1810_v20, %v1709_v62  ;;  %v1850_v37 = vmul.f32 %v1709_v62, %v1709_v62  ;;  %1920 = vst [vmem:[%s3165_s12 + $0x40] sm:$0xff] %v1709_v62  ;;  %v2187_v25 = vpop.f32.mrb[10].mxu0 }
 0x1c5   : > { %1923 = vst [vmem:[%s3165_s12 + $0x58] sm:$0xff] %v2187_v25  ;;  %v1712_v50 = vpop.f32.mrb[11].mxu0  ;;  %v1853_v7 = vmul.f32 %v2187_v25, %v2187_v25 }
 0x1c6   : > { %v1881_v49 = vadd.f32 %v1880_v0, %v1850_v37  ;;  %v1812_v39 = vadd.f32 %v1811_v11, %v1712_v50  ;;  %v1851_v36 = vmul.f32 %v1712_v50, %v1712_v50  ;;  %1921 = vst [vmem:[%s3165_s12 + $0x48] sm:$0xff] %v1712_v50 }
 0x1c8   : > { %v1813_v41 = vadd.f32 %v2186_v60, %v1812_v39  ;;  %v1882_v33 = vadd.f32 %v1881_v49, %v1851_v36 }
 0x1ca   : > { %v1883_v38 = vadd.f32 %v1882_v33, %v1852_v2  ;;  %v1814_v35 = vadd.f32 %v2187_v25, %v1813_v41 }
 0x1cc   : > { %v1884_v40 = vadd.f32 %v1883_v38, %v1853_v7 }
 0x1e2   : > { %v2190_v21 = vpop.f32.mrb[12].mxu0 }
 0x1e3   : > { %1926 = vst [vmem:[%s3165_s12 + $0x70] sm:$0xff] %v2190_v21  ;;  %v1725_v10 = vpop.f32.mrb[13].mxu0  ;;  %v1856_v8 = vmul.f32 %v2190_v21, %v2190_v21 }
 0x1e4   : > { %v1815_v31 = vadd.f32 %v1814_v35, %v1725_v10  ;;  %v1854_v1 = vmul.f32 %v1725_v10, %v1725_v10  ;;  %1924 = vst [vmem:[%s3165_s12 + $0x60] sm:$0xff] %v1725_v10  ;;  %v2191_v43 = vpop.f32.mrb[14].mxu0 }
 0x1e5   : > { %1927 = vst [vmem:[%s3165_s12 + $0x78] sm:$0xff] %v2191_v43  ;;  %v1728_v23 = vpop.f32.mrb[15].mxu0  ;;  %v1857_v32 = vmul.f32 %v2191_v43, %v2191_v43 }
 0x1e6   : > { %v1885_v4 = vadd.f32 %v1884_v40, %v1854_v1  ;;  %v1816_v44 = vadd.f32 %v1815_v31, %v1728_v23  ;;  %v1855_v18 = vmul.f32 %v1728_v23, %v1728_v23  ;;  %1925 = vst [vmem:[%s3165_s12 + $0x68] sm:$0xff] %v1728_v23 }
 0x1e8   : > { %v1817_v57 = vadd.f32 %v2190_v21, %v1816_v44  ;;  %v1886_v55 = vadd.f32 %v1885_v4, %v1855_v18 }
 0x1ea   : > { %v1887_v52 = vadd.f32 %v1886_v55, %v1856_v8  ;;  %v1818_v58 = vadd.f32 %v2191_v43, %v1817_v57 }
 0x1ec   : > { %v1888_v34 = vadd.f32 %v1887_v52, %v1857_v32 }
 0x202   : > { %v2194_v15 = vpop.f32.mrb[0].mxu1 }
 0x203   : > { %1930 = vst [vmem:[%s3165_s12 + $0x90] sm:$0xff] %v2194_v15  ;;  %v1741_v59 = vpop.f32.mrb[1].mxu1  ;;  %v1860_v12 = vmul.f32 %v2194_v15, %v2194_v15 }
 0x204   : > { %v1819_v61 = vadd.f32 %v1818_v58, %v1741_v59  ;;  %v1858_v30 = vmul.f32 %v1741_v59, %v1741_v59  ;;  %1928 = vst [vmem:[%s3165_s12 + $0x80] sm:$0xff] %v1741_v59  ;;  %v2195_v63 = vpop.f32.mrb[2].mxu1 }
 0x205   : > { %1931 = vst [vmem:[%s3165_s12 + $0x98] sm:$0xff] %v2195_v63  ;;  %v1744_v54 = vpop.f32.mrb[3].mxu1  ;;  %v1861_v53 = vmul.f32 %v2195_v63, %v2195_v63 }
 0x206   : > { %v1889_v9 = vadd.f32 %v1888_v34, %v1858_v30  ;;  %v1820_v45 = vadd.f32 %v1819_v61, %v1744_v54  ;;  %v1859_v47 = vmul.f32 %v1744_v54, %v1744_v54  ;;  %1929 = vst [vmem:[%s3165_s12 + $0x88] sm:$0xff] %v1744_v54 }
 0x208   : > { %v1821_v13 = vadd.f32 %v2194_v15, %v1820_v45  ;;  %v1890_v14 = vadd.f32 %v1889_v9, %v1859_v47 }
 0x20a   : > { %v1891_v42 = vadd.f32 %v1890_v14, %v1860_v12  ;;  %v1822_v46 = vadd.f32 %v2195_v63, %v1821_v13 }
 0x20c   : > { %v1892_v48 = vadd.f32 %v1891_v42, %v1861_v53 }
 0x222   : > { %v2198_v16 = vpop.f32.mrb[4].mxu1 }
 0x223   : > { %1934 = vst [vmem:[%s3165_s12 + $0xb0] sm:$0xff] %v2198_v16  ;;  %v1757_v17 = vpop.f32.mrb[5].mxu1  ;;  %v1864_v28 = vmul.f32 %v2198_v16, %v2198_v16 }
 0x224   : > { %v1823_v19 = vadd.f32 %v1822_v46, %v1757_v17  ;;  %v1862_v5 = vmul.f32 %v1757_v17, %v1757_v17  ;;  %1932 = vst [vmem:[%s3165_s12 + $0xa0] sm:$0xff] %v1757_v17  ;;  %v2199_v24 = vpop.f32.mrb[6].mxu1 }
 0x225   : > { %1935 = vst [vmem:[%s3165_s12 + $0xb8] sm:$0xff] %v2199_v24  ;;  %v1760_v29 = vpop.f32.mrb[7].mxu1  ;;  %v1865_v56 = vmul.f32 %v2199_v24, %v2199_v24 }
 0x226   : > { %v1893_v27 = vadd.f32 %v1892_v48, %v1862_v5  ;;  %v1824_v3 = vadd.f32 %v1823_v19, %v1760_v29  ;;  %v1863_v26 = vmul.f32 %v1760_v29, %v1760_v29  ;;  %1933 = vst [vmem:[%s3165_s12 + $0xa8] sm:$0xff] %v1760_v29 }
 0x228   : > { %v1825_v6 = vadd.f32 %v2198_v16, %v1824_v3  ;;  %v1894_v22 = vadd.f32 %v1893_v27, %v1863_v26 }
 0x22a   : > { %v1895_v51 = vadd.f32 %v1894_v22, %v1864_v28  ;;  %v1826_v20 = vadd.f32 %v2199_v24, %v1825_v6 }
 0x22c   : > { %v1896_v0 = vadd.f32 %v1895_v51, %v1865_v56 }
 0x242   : > { %v2202_v60 = vpop.f32.mrb[8].mxu1 }
 0x243   : > { %1938 = vst [vmem:[%s3165_s12 + $0xd0] sm:$0xff] %v2202_v60  ;;  %v1773_v62 = vpop.f32.mrb[9].mxu1  ;;  %v1868_v2 = vmul.f32 %v2202_v60, %v2202_v60 }
 0x244   : > { %v1827_v11 = vadd.f32 %v1826_v20, %v1773_v62  ;;  %v1866_v37 = vmul.f32 %v1773_v62, %v1773_v62  ;;  %1936 = vst [vmem:[%s3165_s12 + $0xc0] sm:$0xff] %v1773_v62  ;;  %v2203_v25 = vpop.f32.mrb[10].mxu1 }
 0x245   : > { %1939 = vst [vmem:[%s3165_s12 + $0xd8] sm:$0xff] %v2203_v25  ;;  %v1776_v50 = vpop.f32.mrb[11].mxu1  ;;  %v1869_v7 = vmul.f32 %v2203_v25, %v2203_v25 }
 0x246   : > { %v1897_v49 = vadd.f32 %v1896_v0, %v1866_v37  ;;  %v1828_v39 = vadd.f32 %v1827_v11, %v1776_v50  ;;  %v1867_v36 = vmul.f32 %v1776_v50, %v1776_v50  ;;  %1937 = vst [vmem:[%s3165_s12 + $0xc8] sm:$0xff] %v1776_v50 }
 0x248   : > { %v1829_v41 = vadd.f32 %v2202_v60, %v1828_v39  ;;  %v1898_v33 = vadd.f32 %v1897_v49, %v1867_v36 }
 0x24a   : > { %v1899_v38 = vadd.f32 %v1898_v33, %v1868_v2  ;;  %v1830_v35 = vadd.f32 %v2203_v25, %v1829_v41 }
 0x24c   : > { %v1900_v40 = vadd.f32 %v1899_v38, %v1869_v7 }
 0x25f   : > { %v2206_v21 = vpop.f32.mrb[12].mxu1 }
 0x260   : > { %1942 = vst [vmem:[%s3165_s12 + $0xf0] sm:$0xff] %v2206_v21  ;;  %v1789_v10 = vpop.f32.mrb[13].mxu1  ;;  %v1872_v8 = vmul.f32 %v2206_v21, %v2206_v21 }
 0x261   : > { %v1831_v31 = vadd.f32 %v1830_v35, %v1789_v10  ;;  %v1870_v1 = vmul.f32 %v1789_v10, %v1789_v10  ;;  %1940 = vst [vmem:[%s3165_s12 + $0xe0] sm:$0xff] %v1789_v10  ;;  %v2207_v43 = vpop.f32.mrb[14].mxu1 }
 0x262   : > { %1943 = vst [vmem:[%s3165_s12 + $0xf8] sm:$0xff] %v2207_v43  ;;  %v1792_v23 = vpop.f32.mrb[15].mxu1  ;;  %v1873_v32 = vmul.f32 %v2207_v43, %v2207_v43 }
 0x263   : > { %v1901_v4 = vadd.f32 %v1900_v40, %v1870_v1  ;;  %v1832_v44 = vadd.f32 %v1831_v31, %v1792_v23  ;;  %v1871_v18 = vmul.f32 %v1792_v23, %v1792_v23  ;;  %1941 = vst [vmem:[%s3165_s12 + $0xe8] sm:$0xff] %v1792_v23 }
 0x265   : > { %v1833_v57 = vadd.f32 %v2206_v21, %v1832_v44  ;;  %v1902_v55 = vadd.f32 %v1901_v4, %v1871_v18 }
 0x267   : > { %v1834_v52 = vadd.f32 %v2207_v43, %v1833_v57  ;;  %v1903_v58 = vadd.f32 %v1902_v55, %v1872_v8 }
 0x269   : > { %v1835_v34 = vrot.slane %v1834_v52, 4  ;;  %v1904_v15 = vadd.f32 %v1903_v58, %v1873_v32 }
 0x26b   : > { %v1836_v59 = vadd.f32 %v1835_v34, %v1834_v52  ;;  %v1905_v61 = vrot.slane %v1904_v15, 4 }
 0x26d   : > { %v1837_v30 = vrot.slane %v1836_v59, 2  ;;  %v1906_v63 = vadd.f32 %v1905_v61, %v1904_v15 }
 0x26f   : > { %v1838_v54 = vadd.f32 %v1837_v30, %v1836_v59  ;;  %v1907_v9 = vrot.slane %v1906_v63, 2 }
 0x271   : > { %v1839_v45 = vrot.slane %v1838_v54, 1  ;;  %v1908_v47 = vadd.f32 %v1907_v9, %v1906_v63 }
 0x273   : > { %v1840_v12 = vadd.f32 %v1839_v45, %v1838_v54  ;;  %v1909_v13 = vrot.slane %v1908_v47, 1 }
 0x275   : > { %1841 = vst [vmem:[%s211_s17] sm:$0x1] %v1840_v12  ;;  %v1910_v14 = vadd.f32 %v1909_v13, %v1908_v47 }
 0x277   : > { %1911 = vst [vmem:[%s214_s20] sm:$0x1] %v1910_v14 }
 0x278 PF: > { %s15_s15 = sadd.s32 1, %s2260_s15  }
 0x279   : > { %p12_p4 = scmp.ge.s32.totalorder %s15_s15, 4  }
 0x27b   :  { %14 = sbr.rel (!%p12_p4) target bundleno = 1 (0x1), region = 82 }

</bundles_post_ra>
